<compile_context>
chip_gen: v5e
topology: v5e:2x2
jax: 0.10.0
libtpu: 0.0.40
codegen_flags: <defaults>
</compile_context>

<pallas_src>
import functools
import math

import jax
import jax.numpy as jnp
from jax.experimental import pallas as pl
from jax.experimental.pallas import tpu as pltpu

LN_EPS = 1e-5          # PyTorch LayerNorm default
LEAKY_SLOPE = 0.2      # LeakyReLU(0.2) used in FF / deep_out
NEG_INF = -1e30        # additive causal-mask value


# ----------------------------------------------------------------------------
# small helpers (pure jnp, usable both inside kernels and in the reference)
# ----------------------------------------------------------------------------
def _layer_norm(x, g, b):
    mu = jnp.mean(x, axis=-1, keepdims=True)
    var = jnp.mean((x - mu) ** 2, axis=-1, keepdims=True)
    return (x - mu) * jax.lax.rsqrt(var + LN_EPS) * g + b


def _leaky_relu(x, slope=LEAKY_SLOPE):
    return jnp.where(x > 0, x, slope * x)


def encode_position(dim, length):
    """Matches encode_position() of the PyTorch code."""
    pos = jnp.arange(length, dtype=jnp.float32)[:, None]
    inv = 1.0 / (1000.0 ** (jnp.arange(0, dim, 2, dtype=jnp.float32) / dim))
    enc = pos @ inv[None, :]                                  # (length, dim//2)
    return jnp.stack([jnp.sin(enc), jnp.cos(enc)], axis=-1).reshape(length, dim)


def causal_mask_bias(seq_len):
    """Additive mask (reference only): 0 where key <= query, -1e30 otherwise."""
    idx = jnp.arange(seq_len)
    return jnp.where(idx[None, :] > idx[:, None], NEG_INF, 0.0).astype(jnp.float32)


# ----------------------------------------------------------------------------
# fused grid-less kernel:
#   embedding + n_blocks transformer blocks + deep_out + pos/vel/acc
# all weights live whole in VMEM; activations stay in vregs.
# ----------------------------------------------------------------------------
def _generator_kernel(x_ref, w_emb_ref, emb_add_ref,
                      w_qkv_ref, b_qkv_ref, w_o_ref, vec_e_ref,
                      w_f1_ref, b_f1_ref, w_f2_ref,
                      w_d1_ref, vec_p_ref, w_d2_ref, b_d2_ref,
                      out_ref, *, n_heads, n_blocks, batch, seq_len, d_out):
    bf16 = jnp.bfloat16
    f32 = jnp.float32
    bt = batch * seq_len
    emb = w_emb_ref.shape[1]
    dh = emb // n_heads
    scale = 1.0 / math.sqrt(dh)

    # ---- embedding + (bias + scaled positional encoding) --------------------
    x = x_ref[...]                                            # (B*T, 3*d_out) f32
    h = jnp.dot(x.astype(bf16), w_emb_ref[...], preferred_element_type=f32)
    h = (h.reshape(batch, seq_len, emb)
         + emb_add_ref[...][None]).reshape(bt, emb)           # broadcast over B

    # ---- causal mask generated in-kernel (no (T,T) HBM input) ---------------
    row = jax.lax.broadcasted_iota(jnp.int32, (seq_len, seq_len), 0)
    col = jax.lax.broadcasted_iota(jnp.int32, (seq_len, seq_len), 1)
    mask = jnp.where(col > row, NEG_INF, 0.0).astype(f32)     # (T, T) additive

    # ---- transformer blocks (static unroll, tiny n_blocks) ------------------
    for i in range(n_blocks):
        qkv = (jnp.dot(h.astype(bf16), w_qkv_ref[i],
                       preferred_element_type=f32) + b_qkv_ref[i])   # (B*T, 3E)
        qkv_bf = qkv.astype(bf16).reshape(batch, seq_len, 3 * emb)   # single cast
        q3 = qkv_bf[:, :, :emb]
        k3 = qkv_bf[:, :, emb:2 * emb]
        v3 = qkv_bf[:, :, 2 * emb:]

        # per-head score matmuls (safe 1-batch-dim einsums), softmax batched
        scores = []
        for hd in range(n_heads):                             # static unroll
            sl = slice(hd * dh, (hd + 1) * dh)
            scores.append(jnp.einsum('bqd,bkd->bqk', q3[:, :, sl], k3[:, :, sl],
                                     preferred_element_type=f32))
        s_all = jnp.concatenate(scores, axis=0) * scale + mask       # (H*B, T, T)
        s_all = s_all - jnp.max(s_all, axis=-1, keepdims=True)
        p_all = jnp.exp(s_all)
        p_all = p_all * pl.reciprocal(jnp.sum(p_all, axis=-1, keepdims=True),
                                      approx=True)
        p_bf = p_all.astype(bf16)

        heads = []
        for hd in range(n_heads):                             # static unroll
            sl = slice(hd * dh, (hd + 1) * dh)
            heads.append(jnp.einsum('bqk,bkd->bqd',
                                    p_bf[hd * batch:(hd + 1) * batch],
                                    v3[:, :, sl],
                                    preferred_element_type=f32))
        attn = jnp.concatenate(heads, axis=-1).reshape(bt, emb)      # stays in vregs

        vec_e = vec_e_ref[i]          # rows: bo, bf2, g_mha, b_mha, g_ff, b_ff
        attn = (jnp.dot(attn.astype(bf16), w_o_ref[i],
                        preferred_element_type=f32) + vec_e[0:1])
        h1 = _layer_norm(h + attn, vec_e[2:3], vec_e[3:4])           # norm_mha
        ff = (jnp.dot(h1.astype(bf16), w_f1_ref[i],
                      preferred_element_type=f32) + b_f1_ref[i])
        ff = _leaky_relu(ff)
        ff = (jnp.dot(ff.astype(bf16), w_f2_ref[i],
                      preferred_element_type=f32) + vec_e[1:2])
        h = _layer_norm(h1 + ff, vec_e[4:5], vec_e[5:6])             # norm_ff

    # ---- deep_out on ALL tokens + pos/vel/acc --------------------------------
    vec_p = vec_p_ref[...]                                    # rows: b1, gamma, beta
    z = (jnp.dot(h.astype(bf16), w_d1_ref[...],
                 preferred_element_type=f32) + vec_p[0:1])
    z = _leaky_relu(_layer_norm(z, vec_p[1:2], vec_p[2:3]))
    vel = (jnp.dot(z.astype(bf16), w_d2_ref[...],
                   preferred_element_type=f32) + b_d2_ref[...])      # (B*T, D)
    pos = x[:, :d_out] + vel
    acc = vel - x[:, d_out:2 * d_out]
    out_ref[...] = jnp.concatenate([pos, vel, acc], axis=-1)


def generator_forward_pallas(kp, inpt_seq, obs_len, len_to_decode, n_heads):
    assert len_to_decode == 0
    B, T, d_in = inpt_seq.shape
    assert T % 8 == 0, "in-kernel (B*T,E)<->(B,T,E) reshapes assume T % 8 == 0"
    d_out = d_in // 3
    bt = B * T
    n_blocks = kp["w_qkv"].shape[0]
    x2d = inpt_seq.reshape(bt, d_in)

    vmem_spec = pl.BlockSpec(memory_space=pltpu.MemorySpace.VMEM)
    n_in = 14

    out2d = pl.pallas_call(
        functools.partial(_generator_kernel, n_heads=n_heads, n_blocks=n_blocks,
                          batch=B, seq_len=T, d_out=d_out),
        out_shape=jax.ShapeDtypeStruct((bt, 3 * d_out), jnp.float32),
        in_specs=[vmem_spec] * n_in,
        out_specs=vmem_spec,
    )(x2d, kp["w_emb"], kp["emb_add"],
      kp["w_qkv"], kp["b_qkv"], kp["w_o"], kp["vec_e"],
      kp["w_f1"], kp["b_f1"], kp["w_f2"],
      kp["w_d1"], kp["vec_p"], kp["w_d2"], kp["b_d2"])

    out = out2d.reshape(B, T, 3 * d_out)
    return out[:, :obs_len - 1], out[:, obs_len - 1:-1]


# ----------------------------------------------------------------------------
# parameter construction (deterministic, PyTorch-style shapes)
# ----------------------------------------------------------------------------
def _linear(key, fan_in, fan_out):
    kw, kb = jax.random.split(key)
    bound = 1.0 / math.sqrt(fan_in)
    w = jax.random.uniform(kw, (fan_out, fan_in), jnp.float32, -bound, bound)
    b = jax.random.uniform(kb, (fan_out,), jnp.float32, -bound, bound)
    return w, b


def init_params(key, total_in_dim, emb_dim, n_blocks, proj_dim, out_dim):
    keys = jax.random.split(key, 3 + 4 * n_blocks)
    ki = iter(keys)
    p = {}
    p["emb_w"], p["emb_b"] = _linear(next(ki), total_in_dim, emb_dim)
    blocks = []
    for _ in range(n_blocks):
        in_w, in_b = _linear(next(ki), emb_dim, 3 * emb_dim)   # MHA in_proj
        out_w, out_b = _linear(next(ki), emb_dim, emb_dim)     # MHA out_proj
        f1_w, f1_b = _linear(next(ki), emb_dim, proj_dim)
        f2_w, f2_b = _linear(next(ki), proj_dim, emb_dim)
        blocks.append(dict(
            in_w=in_w, in_b=in_b, out_w=out_w, out_b=out_b,
            f1_w=f1_w, f1_b=f1_b, f2_w=f2_w, f2_b=f2_b,
            g1=jnp.ones((emb_dim,), jnp.float32), be1=jnp.zeros((emb_dim,), jnp.float32),
            g2=jnp.ones((emb_dim,), jnp.float32), be2=jnp.zeros((emb_dim,), jnp.float32)))
    p["blocks"] = blocks
    d1_w, d1_b = _linear(next(ki), emb_dim, proj_dim)
    d2_w, d2_b = _linear(next(ki), proj_dim, out_dim)
    p["deep"] = dict(w1=d1_w, b1=d1_b,
                     g=jnp.ones((proj_dim,), jnp.float32),
                     be=jnp.zeros((proj_dim,), jnp.float32),
                     w2=d2_w, b2=d2_b)
    return p


def kernel_ready_params(p, pos_scaled):
    """Stack per-block weights (leading n_blocks axis), pre-transpose to
    [in, out], pack the small E/P-sized vectors, cast matmul weights to bf16.
    emb_add is (T, E) — broadcast over batch happens inside the kernel."""
    bf16 = jnp.bfloat16
    blocks = p["blocks"]
    d = p["deep"]
    return {
        "w_emb": p["emb_w"].T.astype(bf16),
        "emb_add": p["emb_b"][None, :] + pos_scaled,                 # (T, E)
        "w_qkv": jnp.stack([b["in_w"].T for b in blocks]).astype(bf16),
        "b_qkv": jnp.stack([b["in_b"][None, :] for b in blocks]),
        "w_o": jnp.stack([b["out_w"].T for b in blocks]).astype(bf16),
        "vec_e": jnp.stack([jnp.stack([b["out_b"], b["f2_b"], b["g1"], b["be1"],
                                       b["g2"], b["be2"]]) for b in blocks]),
        "w_f1": jnp.stack([b["f1_w"].T for b in blocks]).astype(bf16),
        "b_f1": jnp.stack([b["f1_b"][None, :] for b in blocks]),
        "w_f2": jnp.stack([b["f2_w"].T for b in blocks]).astype(bf16),
        "w_d1": d["w1"].T.astype(bf16),
        "vec_p": jnp.stack([d["b1"], d["g"], d["be"]]),
        "w_d2": d["w2"].T.astype(bf16),
        "b_d2": d["b2"][None, :],
    }


# ----------------------------------------------------------------------------
# pure-JAX reference (mirrors the kernel's bf16/f32 precision choices)
# ----------------------------------------------------------------------------
def generator_forward_ref(kp, x2d, mask_bias, n_heads, batch, seq_len, d_out):
    bf16 = jnp.bfloat16
    f32 = jnp.float32
    emb = kp["w_emb"].shape[1]
    dh = emb // n_heads
    scale = 1.0 / math.sqrt(dh)
    n_blocks = kp["w_qkv"].shape[0]

    h = jnp.dot(x2d.astype(bf16), kp["w_emb"], preferred_element_type=f32)
    h = (h.reshape(batch, seq_len, emb)
         + kp["emb_add"][None]).reshape(batch * seq_len, emb)
    for i in range(n_blocks):
        qkv = (jnp.dot(h.astype(bf16), kp["w_qkv"][i],
                       preferred_element_type=f32) + kp["b_qkv"][i])
        q3 = qkv[:, :emb].reshape(batch, seq_len, emb)
        k3 = qkv[:, emb:2 * emb].reshape(batch, seq_len, emb)
        v3 = qkv[:, 2 * emb:].reshape(batch, seq_len, emb)
        heads = []
        for hd in range(n_heads):
            sl = slice(hd * dh, (hd + 1) * dh)
            s = jnp.einsum('bqd,bkd->bqk', q3[:, :, sl].astype(bf16),
                           k3[:, :, sl].astype(bf16),
                           preferred_element_type=f32) * scale + mask_bias
            s = s - jnp.max(s, axis=-1, keepdims=True)
            pr = jnp.exp(s)
            pr = pr / jnp.sum(pr, axis=-1, keepdims=True)
            heads.append(jnp.einsum('bqk,bkd->bqd', pr.astype(bf16),
                                    v3[:, :, sl].astype(bf16),
                                    preferred_element_type=f32))
        vec_e = kp["vec_e"][i]
        attn = jnp.concatenate(heads, axis=-1).reshape(batch * seq_len, emb)
        attn = (jnp.dot(attn.astype(bf16), kp["w_o"][i],
                        preferred_element_type=f32) + vec_e[0:1])
        h1 = _layer_norm(h + attn, vec_e[2:3], vec_e[3:4])
        ff = _leaky_relu(jnp.dot(h1.astype(bf16), kp["w_f1"][i],
                                 preferred_element_type=f32) + kp["b_f1"][i])
        ff = jnp.dot(ff.astype(bf16), kp["w_f2"][i], preferred_element_type=f32) + vec_e[1:2]
        h = _layer_norm(h1 + ff, vec_e[4:5], vec_e[5:6])

    vec_p = kp["vec_p"]
    z = jnp.dot(h.astype(bf16), kp["w_d1"], preferred_element_type=f32) + vec_p[0:1]
    z = _leaky_relu(_layer_norm(z, vec_p[1:2], vec_p[2:3]))
    vel = jnp.dot(z.astype(bf16), kp["w_d2"], preferred_element_type=f32) + kp["b_d2"]
    pos = x2d[:, :d_out] + vel
    acc = vel - x2d[:, d_out:2 * d_out]
    return jnp.concatenate([pos, vel, acc], axis=-1)


# ----------------------------------------------------------------------------
if __name__ == "__main__":
    # TransformerGenerator config (small):
    #   input_size=8, velocity_input=True, acceleration_input=True
    #     -> decoder in_dim=[8,8,8], total_in_dim=24, input_data == inpt_seq
    #   emb_dim=32, n_heads=4, n_blocks=2, hidden_size(proj_dim)=64,
    #   dropout=0, temp_mixing=False, pool_in_do=False, dual_stream=False.
    B, T = 2, 8
    D_IN = 8                    # config.input_size == output_size
    DIN_TOTAL = 3 * D_IN        # [x | v | a]
    EMB = 32
    HEADS = 4
    BLOCKS = 2
    PROJ = 64
    OBS_LEN = 5
    LEN_TO_DECODE = 0
    N_POSITION = 200
    POS_ENC = False             # TransformerDecoder default used by the generator

    key = jax.random.PRNGKey(0)
    k_par, k_x = jax.random.split(key)
    params = init_params(k_par, DIN_TOTAL, EMB, BLOCKS, PROJ, D_IN)

    scale_fact = 0.02 if POS_ENC else 0.0
    pos_scaled = scale_fact * encode_position(EMB, N_POSITION)[:T]   # (T, EMB)
    kp = kernel_ready_params(params, pos_scaled)

    inpt_seq = jax.random.normal(k_x, (B, T, DIN_TOTAL), jnp.float32)

    obs_out, gen_out = generator_forward_pallas(kp, inpt_seq,
                                                OBS_LEN, LEN_TO_DECODE, HEADS)
    obs_out = jax.block_until_ready(obs_out)
    gen_out = jax.block_until_ready(gen_out)

    mask_bias = causal_mask_bias(T)
    out_ref = generator_forward_ref(kp, inpt_seq.reshape(B * T, DIN_TOTAL),
                                    mask_bias, HEADS, B, T, D_IN)
    out_ref = out_ref.reshape(B, T, 3 * D_IN)
    ref_obs = out_ref[:, :OBS_LEN - 1]
    ref_gen = out_ref[:, OBS_LEN - 1:-1]

    assert obs_out.shape == (B, OBS_LEN - 1, 3 * D_IN)
    assert gen_out.shape == (B, T - OBS_LEN, 3 * D_IN)
    err = max(float(jnp.max(jnp.abs(obs_out - ref_obs))),
              float(jnp.max(jnp.abs(gen_out - ref_gen))))
    assert jnp.allclose(obs_out, ref_obs, rtol=1e-2, atol=1e-2), f"max abs err {err}"
    assert jnp.allclose(gen_out, ref_gen, rtol=1e-2, atol=1e-2), f"max abs err {err}"

    print("KERNEL_OK")
</pallas_src>

<mosaic_0001>
module attributes {stable_mosaic.version = 11 : i64} {
  func.func @_generator_kernel(%arg0: memref<16x24xf32, #tpu.memory_space<vmem>>, %arg1: memref<24x32xbf16, #tpu.memory_space<vmem>>, %arg2: memref<8x32xf32, #tpu.memory_space<vmem>>, %arg3: memref<2x32x96xbf16, #tpu.memory_space<vmem>>, %arg4: memref<2x1x96xf32, #tpu.memory_space<vmem>>, %arg5: memref<2x32x32xbf16, #tpu.memory_space<vmem>>, %arg6: memref<2x6x32xf32, #tpu.memory_space<vmem>>, %arg7: memref<2x32x64xbf16, #tpu.memory_space<vmem>>, %arg8: memref<2x1x64xf32, #tpu.memory_space<vmem>>, %arg9: memref<2x64x32xbf16, #tpu.memory_space<vmem>>, %arg10: memref<32x64xbf16, #tpu.memory_space<vmem>>, %arg11: memref<3x64xf32, #tpu.memory_space<vmem>>, %arg12: memref<64x8xbf16, #tpu.memory_space<vmem>>, %arg13: memref<1x8xf32, #tpu.memory_space<vmem>>, %arg14: memref<16x24xf32, #tpu.memory_space<vmem>>) attributes {dimension_semantics = [], scalar_prefetch = 0 : i64, scratch_operands = 0 : i64, tpu.core_type = #tpu.core_type<tc>} {
    %c0 = arith.constant 0 : index
    %c0_0 = arith.constant 0 : index
    %0 = vector.load %arg0[%c0, %c0_0] : memref<16x24xf32, #tpu.memory_space<vmem>>, vector<16x24xf32>
    %1 = arith.truncf %0 : vector<16x24xf32> to vector<16x24xbf16>
    %c0_1 = arith.constant 0 : index
    %c0_2 = arith.constant 0 : index
    %2 = vector.load %arg1[%c0_1, %c0_2] : memref<24x32xbf16, #tpu.memory_space<vmem>>, vector<24x32xbf16>
    %cst = arith.constant dense<0.000000e+00> : vector<16x32xf32>
    %3 = tpu.matmul %1, %2, %cst {dimension_numbers = #tpu.dot_dimension_numbers<[1], [0], [0], [1], [0, 0, 1, 1], [], []>} : vector<16x24xbf16>, vector<24x32xbf16>, vector<16x32xf32> -> vector<16x32xf32>
    %4 = vector.shape_cast %3 : vector<16x32xf32> to vector<2x8x32xf32>
    %c0_3 = arith.constant 0 : index
    %c0_4 = arith.constant 0 : index
    %5 = vector.load %arg2[%c0_3, %c0_4] : memref<8x32xf32, #tpu.memory_space<vmem>>, vector<8x32xf32>
    %6 = vector.shape_cast %5 : vector<8x32xf32> to vector<1x8x32xf32>
    %7 = vector.broadcast %6 : vector<1x8x32xf32> to vector<2x8x32xf32>
    %8 = arith.addf %4, %7 : vector<2x8x32xf32>
    %9 = vector.shape_cast %8 : vector<2x8x32xf32> to vector<16x32xf32>
    %10 = tpu.iota {dimensions = array<i32: 0>} : vector<8x8xi32>
    %11 = tpu.iota {dimensions = array<i32: 1>} : vector<8x8xi32>
    %12 = arith.cmpi sgt, %11, %10 : vector<8x8xi32>
    %cst_5 = arith.constant -1.000000e+30 : f32
    %cst_6 = arith.constant 0.000000e+00 : f32
    %13 = vector.broadcast %cst_5 : f32 to vector<8x8xf32>
    %14 = vector.broadcast %cst_6 : f32 to vector<8x8xf32>
    %15 = arith.select %12, %13, %14 : vector<8x8xi1>, vector<8x8xf32>
    %16 = arith.truncf %9 : vector<16x32xf32> to vector<16x32xbf16>
    %c0_7 = arith.constant 0 : index
    %c0_8 = arith.constant 0 : index
    %c0_9 = arith.constant 0 : index
    %17 = vector.load %arg3[%c0_7, %c0_8, %c0_9] : memref<2x32x96xbf16, #tpu.memory_space<vmem>>, vector<1x32x96xbf16>
    %18 = vector.shape_cast %17 : vector<1x32x96xbf16> to vector<32x96xbf16>
    %cst_10 = arith.constant dense<0.000000e+00> : vector<16x96xf32>
    %19 = tpu.matmul %16, %18, %cst_10 {dimension_numbers = #tpu.dot_dimension_numbers<[1], [0], [0], [1], [0, 0, 1, 1], [], []>} : vector<16x32xbf16>, vector<32x96xbf16>, vector<16x96xf32> -> vector<16x96xf32>
    %c0_11 = arith.constant 0 : index
    %c0_12 = arith.constant 0 : index
    %c0_13 = arith.constant 0 : index
    %20 = vector.load %arg4[%c0_11, %c0_12, %c0_13] : memref<2x1x96xf32, #tpu.memory_space<vmem>>, vector<1x1x96xf32>
    %21 = vector.shape_cast %20 : vector<1x1x96xf32> to vector<1x96xf32>
    %22 = vector.broadcast %21 : vector<1x96xf32> to vector<16x96xf32>
    %23 = arith.addf %19, %22 : vector<16x96xf32>
    %24 = arith.truncf %23 : vector<16x96xf32> to vector<16x96xbf16>
    %25 = vector.shape_cast %24 : vector<16x96xbf16> to vector<2x8x96xbf16>
    %26 = vector.extract_strided_slice %25 {offsets = [0, 0, 0], sizes = [2, 8, 32], strides = [1, 1, 1]} : vector<2x8x96xbf16> to vector<2x8x32xbf16>
    %27 = vector.extract_strided_slice %25 {offsets = [0, 0, 32], sizes = [2, 8, 32], strides = [1, 1, 1]} : vector<2x8x96xbf16> to vector<2x8x32xbf16>
    %28 = vector.extract_strided_slice %25 {offsets = [0, 0, 64], sizes = [2, 8, 32], strides = [1, 1, 1]} : vector<2x8x96xbf16> to vector<2x8x32xbf16>
    %29 = vector.extract_strided_slice %26 {offsets = [0, 0, 0], sizes = [2, 8, 8], strides = [1, 1, 1]} : vector<2x8x32xbf16> to vector<2x8x8xbf16>
    %30 = vector.extract_strided_slice %27 {offsets = [0, 0, 0], sizes = [2, 8, 8], strides = [1, 1, 1]} : vector<2x8x32xbf16> to vector<2x8x8xbf16>
    "tpu.trace_start"() <{level = 10 : i32, message = "bqd,bkd->bqk"}> : () -> ()
    %cst_14 = arith.constant dense<0.000000e+00> : vector<2x8x8xf32>
    %31 = tpu.matmul %29, %30, %cst_14 {dimension_numbers = #tpu.dot_dimension_numbers<[2], [2], [1], [1], [0, 0, 0, 1, 1, 1], [0], [0]>} : vector<2x8x8xbf16>, vector<2x8x8xbf16>, vector<2x8x8xf32> -> vector<2x8x8xf32>
    "tpu.trace_stop"() : () -> ()
    %32 = vector.extract_strided_slice %26 {offsets = [0, 0, 8], sizes = [2, 8, 8], strides = [1, 1, 1]} : vector<2x8x32xbf16> to vector<2x8x8xbf16>
    %33 = vector.extract_strided_slice %27 {offsets = [0, 0, 8], sizes = [2, 8, 8], strides = [1, 1, 1]} : vector<2x8x32xbf16> to vector<2x8x8xbf16>
    "tpu.trace_start"() <{level = 10 : i32, message = "bqd,bkd->bqk"}> : () -> ()
    %cst_15 = arith.constant dense<0.000000e+00> : vector<2x8x8xf32>
    %34 = tpu.matmul %32, %33, %cst_15 {dimension_numbers = #tpu.dot_dimension_numbers<[2], [2], [1], [1], [0, 0, 0, 1, 1, 1], [0], [0]>} : vector<2x8x8xbf16>, vector<2x8x8xbf16>, vector<2x8x8xf32> -> vector<2x8x8xf32>
    "tpu.trace_stop"() : () -> ()
    %35 = vector.extract_strided_slice %26 {offsets = [0, 0, 16], sizes = [2, 8, 8], strides = [1, 1, 1]} : vector<2x8x32xbf16> to vector<2x8x8xbf16>
    %36 = vector.extract_strided_slice %27 {offsets = [0, 0, 16], sizes = [2, 8, 8], strides = [1, 1, 1]} : vector<2x8x32xbf16> to vector<2x8x8xbf16>
    "tpu.trace_start"() <{level = 10 : i32, message = "bqd,bkd->bqk"}> : () -> ()
    %cst_16 = arith.constant dense<0.000000e+00> : vector<2x8x8xf32>
    %37 = tpu.matmul %35, %36, %cst_16 {dimension_numbers = #tpu.dot_dimension_numbers<[2], [2], [1], [1], [0, 0, 0, 1, 1, 1], [0], [0]>} : vector<2x8x8xbf16>, vector<2x8x8xbf16>, vector<2x8x8xf32> -> vector<2x8x8xf32>
    "tpu.trace_stop"() : () -> ()
    %38 = vector.extract_strided_slice %26 {offsets = [0, 0, 24], sizes = [2, 8, 8], strides = [1, 1, 1]} : vector<2x8x32xbf16> to vector<2x8x8xbf16>
    %39 = vector.extract_strided_slice %27 {offsets = [0, 0, 24], sizes = [2, 8, 8], strides = [1, 1, 1]} : vector<2x8x32xbf16> to vector<2x8x8xbf16>
    "tpu.trace_start"() <{level = 10 : i32, message = "bqd,bkd->bqk"}> : () -> ()
    %cst_17 = arith.constant dense<0.000000e+00> : vector<2x8x8xf32>
    %40 = tpu.matmul %38, %39, %cst_17 {dimension_numbers = #tpu.dot_dimension_numbers<[2], [2], [1], [1], [0, 0, 0, 1, 1, 1], [0], [0]>} : vector<2x8x8xbf16>, vector<2x8x8xbf16>, vector<2x8x8xf32> -> vector<2x8x8xf32>
    "tpu.trace_stop"() : () -> ()
    %41 = tpu.concatenate %31, %34, %37, %40 in 0 : vector<2x8x8xf32>, vector<2x8x8xf32>, vector<2x8x8xf32>, vector<2x8x8xf32> -> vector<8x8x8xf32>
    %cst_18 = arith.constant 0.353553385 : f32
    %42 = vector.broadcast %cst_18 : f32 to vector<8x8x8xf32>
    %43 = arith.mulf %41, %42 : vector<8x8x8xf32>
    %44 = vector.shape_cast %15 : vector<8x8xf32> to vector<1x8x8xf32>
    %45 = vector.broadcast %44 : vector<1x8x8xf32> to vector<8x8x8xf32>
    %46 = arith.addf %43, %45 : vector<8x8x8xf32>
    %cst_19 = arith.constant dense<0xFF800000> : vector<8x8xf32>
    %47 = vector.multi_reduction <maximumf>, %46, %cst_19 [2] : vector<8x8x8xf32> to vector<8x8xf32>
    %48 = vector.shape_cast %47 : vector<8x8xf32> to vector<8x8x1xf32>
    %49 = vector.broadcast %48 : vector<8x8x1xf32> to vector<8x8x8xf32>
    %50 = arith.subf %46, %49 : vector<8x8x8xf32>
    %51 = math.exp %50 : vector<8x8x8xf32>
    %cst_20 = arith.constant dense<0.000000e+00> : vector<8x8xf32>
    %52 = vector.multi_reduction <add>, %51, %cst_20 [2] : vector<8x8x8xf32> to vector<8x8xf32>
    %53 = vector.shape_cast %52 : vector<8x8xf32> to vector<8x8x1xf32>
    %54 = tpu.reciprocal %53 {approx = true} : vector<8x8x1xf32> -> vector<8x8x1xf32>
    %55 = vector.broadcast %54 : vector<8x8x1xf32> to vector<8x8x8xf32>
    %56 = arith.mulf %51, %55 : vector<8x8x8xf32>
    %57 = arith.truncf %56 : vector<8x8x8xf32> to vector<8x8x8xbf16>
    %58 = vector.extract_strided_slice %57 {offsets = [0, 0, 0], sizes = [2, 8, 8], strides = [1, 1, 1]} : vector<8x8x8xbf16> to vector<2x8x8xbf16>
    %59 = vector.extract_strided_slice %28 {offsets = [0, 0, 0], sizes = [2, 8, 8], strides = [1, 1, 1]} : vector<2x8x32xbf16> to vector<2x8x8xbf16>
    "tpu.trace_start"() <{level = 10 : i32, message = "bqk,bkd->bqd"}> : () -> ()
    %cst_21 = arith.constant dense<0.000000e+00> : vector<2x8x8xf32>
    %60 = tpu.matmul %58, %59, %cst_21 {dimension_numbers = #tpu.dot_dimension_numbers<[2], [1], [1], [2], [0, 0, 0, 1, 1, 2], [0], [0]>} : vector<2x8x8xbf16>, vector<2x8x8xbf16>, vector<2x8x8xf32> -> vector<2x8x8xf32>
    "tpu.trace_stop"() : () -> ()
    %61 = vector.extract_strided_slice %57 {offsets = [2, 0, 0], sizes = [2, 8, 8], strides = [1, 1, 1]} : vector<8x8x8xbf16> to vector<2x8x8xbf16>
    %62 = vector.extract_strided_slice %28 {offsets = [0, 0, 8], sizes = [2, 8, 8], strides = [1, 1, 1]} : vector<2x8x32xbf16> to vector<2x8x8xbf16>
    "tpu.trace_start"() <{level = 10 : i32, message = "bqk,bkd->bqd"}> : () -> ()
    %cst_22 = arith.constant dense<0.000000e+00> : vector<2x8x8xf32>
    %63 = tpu.matmul %61, %62, %cst_22 {dimension_numbers = #tpu.dot_dimension_numbers<[2], [1], [1], [2], [0, 0, 0, 1, 1, 2], [0], [0]>} : vector<2x8x8xbf16>, vector<2x8x8xbf16>, vector<2x8x8xf32> -> vector<2x8x8xf32>
    "tpu.trace_stop"() : () -> ()
    %64 = vector.extract_strided_slice %57 {offsets = [4, 0, 0], sizes = [2, 8, 8], strides = [1, 1, 1]} : vector<8x8x8xbf16> to vector<2x8x8xbf16>
    %65 = vector.extract_strided_slice %28 {offsets = [0, 0, 16], sizes = [2, 8, 8], strides = [1, 1, 1]} : vector<2x8x32xbf16> to vector<2x8x8xbf16>
    "tpu.trace_start"() <{level = 10 : i32, message = "bqk,bkd->bqd"}> : () -> ()
    %cst_23 = arith.constant dense<0.000000e+00> : vector<2x8x8xf32>
    %66 = tpu.matmul %64, %65, %cst_23 {dimension_numbers = #tpu.dot_dimension_numbers<[2], [1], [1], [2], [0, 0, 0, 1, 1, 2], [0], [0]>} : vector<2x8x8xbf16>, vector<2x8x8xbf16>, vector<2x8x8xf32> -> vector<2x8x8xf32>
    "tpu.trace_stop"() : () -> ()
    %67 = vector.extract_strided_slice %57 {offsets = [6, 0, 0], sizes = [2, 8, 8], strides = [1, 1, 1]} : vector<8x8x8xbf16> to vector<2x8x8xbf16>
    %68 = vector.extract_strided_slice %28 {offsets = [0, 0, 24], sizes = [2, 8, 8], strides = [1, 1, 1]} : vector<2x8x32xbf16> to vector<2x8x8xbf16>
    "tpu.trace_start"() <{level = 10 : i32, message = "bqk,bkd->bqd"}> : () -> ()
    %cst_24 = arith.constant dense<0.000000e+00> : vector<2x8x8xf32>
    %69 = tpu.matmul %67, %68, %cst_24 {dimension_numbers = #tpu.dot_dimension_numbers<[2], [1], [1], [2], [0, 0, 0, 1, 1, 2], [0], [0]>} : vector<2x8x8xbf16>, vector<2x8x8xbf16>, vector<2x8x8xf32> -> vector<2x8x8xf32>
    "tpu.trace_stop"() : () -> ()
    %70 = tpu.concatenate %60, %63, %66, %69 in 2 : vector<2x8x8xf32>, vector<2x8x8xf32>, vector<2x8x8xf32>, vector<2x8x8xf32> -> vector<2x8x32xf32>
    %71 = vector.shape_cast %70 : vector<2x8x32xf32> to vector<16x32xf32>
    %c0_25 = arith.constant 0 : index
    %c0_26 = arith.constant 0 : index
    %c0_27 = arith.constant 0 : index
    %72 = vector.load %arg6[%c0_25, %c0_26, %c0_27] : memref<2x6x32xf32, #tpu.memory_space<vmem>>, vector<1x6x32xf32>
    %73 = vector.shape_cast %72 : vector<1x6x32xf32> to vector<6x32xf32>
    %74 = arith.truncf %71 : vector<16x32xf32> to vector<16x32xbf16>
    %c0_28 = arith.constant 0 : index
    %c0_29 = arith.constant 0 : index
    %c0_30 = arith.constant 0 : index
    %75 = vector.load %arg5[%c0_28, %c0_29, %c0_30] : memref<2x32x32xbf16, #tpu.memory_space<vmem>>, vector<1x32x32xbf16>
    %76 = vector.shape_cast %75 : vector<1x32x32xbf16> to vector<32x32xbf16>
    %cst_31 = arith.constant dense<0.000000e+00> : vector<16x32xf32>
    %77 = tpu.matmul %74, %76, %cst_31 {dimension_numbers = #tpu.dot_dimension_numbers<[1], [0], [0], [1], [0, 0, 1, 1], [], []>} : vector<16x32xbf16>, vector<32x32xbf16>, vector<16x32xf32> -> vector<16x32xf32>
    %78 = vector.extract_strided_slice %73 {offsets = [0, 0], sizes = [1, 32], strides = [1, 1]} : vector<6x32xf32> to vector<1x32xf32>
    %79 = vector.broadcast %78 : vector<1x32xf32> to vector<16x32xf32>
    %80 = arith.addf %77, %79 : vector<16x32xf32>
    %81 = arith.addf %9, %80 : vector<16x32xf32>
    %82 = vector.extract_strided_slice %73 {offsets = [2, 0], sizes = [1, 32], strides = [1, 1]} : vector<6x32xf32> to vector<1x32xf32>
    %83 = vector.extract_strided_slice %73 {offsets = [3, 0], sizes = [1, 32], strides = [1, 1]} : vector<6x32xf32> to vector<1x32xf32>
    %cst_32 = arith.constant dense<0.000000e+00> : vector<16xf32>
    %84 = vector.multi_reduction <add>, %81, %cst_32 [1] : vector<16x32xf32> to vector<16xf32>
    %85 = vector.shape_cast %84 : vector<16xf32> to vector<16x1xf32>
    %cst_33 = arith.constant 3.200000e+01 : f32
    %86 = vector.broadcast %cst_33 : f32 to vector<16x1xf32>
    %87 = arith.divf %85, %86 : vector<16x1xf32>
    %88 = vector.broadcast %87 : vector<16x1xf32> to vector<16x32xf32>
    %89 = arith.subf %81, %88 : vector<16x32xf32>
    %90 = arith.mulf %89, %89 : vector<16x32xf32>
    %cst_34 = arith.constant dense<0.000000e+00> : vector<16xf32>
    %91 = vector.multi_reduction <add>, %90, %cst_34 [1] : vector<16x32xf32> to vector<16xf32>
    %92 = vector.shape_cast %91 : vector<16xf32> to vector<16x1xf32>
    %cst_35 = arith.constant 3.200000e+01 : f32
    %93 = vector.broadcast %cst_35 : f32 to vector<16x1xf32>
    %94 = arith.divf %92, %93 : vector<16x1xf32>
    %95 = vector.broadcast %87 : vector<16x1xf32> to vector<16x32xf32>
    %96 = arith.subf %81, %95 : vector<16x32xf32>
    %cst_36 = arith.constant 9.99999974E-6 : f32
    %97 = vector.broadcast %cst_36 : f32 to vector<16x1xf32>
    %98 = arith.addf %94, %97 : vector<16x1xf32>
    %99 = math.rsqrt %98 : vector<16x1xf32>
    %100 = vector.broadcast %99 : vector<16x1xf32> to vector<16x32xf32>
    %101 = arith.mulf %96, %100 : vector<16x32xf32>
    %102 = vector.broadcast %82 : vector<1x32xf32> to vector<16x32xf32>
    %103 = arith.mulf %101, %102 : vector<16x32xf32>
    %104 = vector.broadcast %83 : vector<1x32xf32> to vector<16x32xf32>
    %105 = arith.addf %103, %104 : vector<16x32xf32>
    %106 = arith.truncf %105 : vector<16x32xf32> to vector<16x32xbf16>
    %c0_37 = arith.constant 0 : index
    %c0_38 = arith.constant 0 : index
    %c0_39 = arith.constant 0 : index
    %107 = vector.load %arg7[%c0_37, %c0_38, %c0_39] : memref<2x32x64xbf16, #tpu.memory_space<vmem>>, vector<1x32x64xbf16>
    %108 = vector.shape_cast %107 : vector<1x32x64xbf16> to vector<32x64xbf16>
    %cst_40 = arith.constant dense<0.000000e+00> : vector<16x64xf32>
    %109 = tpu.matmul %106, %108, %cst_40 {dimension_numbers = #tpu.dot_dimension_numbers<[1], [0], [0], [1], [0, 0, 1, 1], [], []>} : vector<16x32xbf16>, vector<32x64xbf16>, vector<16x64xf32> -> vector<16x64xf32>
    %c0_41 = arith.constant 0 : index
    %c0_42 = arith.constant 0 : index
    %c0_43 = arith.constant 0 : index
    %110 = vector.load %arg8[%c0_41, %c0_42, %c0_43] : memref<2x1x64xf32, #tpu.memory_space<vmem>>, vector<1x1x64xf32>
    %111 = vector.shape_cast %110 : vector<1x1x64xf32> to vector<1x64xf32>
    %112 = vector.broadcast %111 : vector<1x64xf32> to vector<16x64xf32>
    %113 = arith.addf %109, %112 : vector<16x64xf32>
    %cst_44 = arith.constant 0.000000e+00 : f32
    %114 = vector.broadcast %cst_44 : f32 to vector<16x64xf32>
    %115 = arith.cmpf ogt, %113, %114 : vector<16x64xf32>
    %cst_45 = arith.constant 2.000000e-01 : f32
    %116 = vector.broadcast %cst_45 : f32 to vector<16x64xf32>
    %117 = arith.mulf %116, %113 : vector<16x64xf32>
    %118 = arith.select %115, %113, %117 : vector<16x64xi1>, vector<16x64xf32>
    %119 = arith.truncf %118 : vector<16x64xf32> to vector<16x64xbf16>
    %c0_46 = arith.constant 0 : index
    %c0_47 = arith.constant 0 : index
    %c0_48 = arith.constant 0 : index
    %120 = vector.load %arg9[%c0_46, %c0_47, %c0_48] : memref<2x64x32xbf16, #tpu.memory_space<vmem>>, vector<1x64x32xbf16>
    %121 = vector.shape_cast %120 : vector<1x64x32xbf16> to vector<64x32xbf16>
    %cst_49 = arith.constant dense<0.000000e+00> : vector<16x32xf32>
    %122 = tpu.matmul %119, %121, %cst_49 {dimension_numbers = #tpu.dot_dimension_numbers<[1], [0], [0], [1], [0, 0, 1, 1], [], []>} : vector<16x64xbf16>, vector<64x32xbf16>, vector<16x32xf32> -> vector<16x32xf32>
    %123 = vector.extract_strided_slice %73 {offsets = [1, 0], sizes = [1, 32], strides = [1, 1]} : vector<6x32xf32> to vector<1x32xf32>
    %124 = vector.broadcast %123 : vector<1x32xf32> to vector<16x32xf32>
    %125 = arith.addf %122, %124 : vector<16x32xf32>
    %126 = arith.addf %105, %125 : vector<16x32xf32>
    %127 = vector.extract_strided_slice %73 {offsets = [4, 0], sizes = [1, 32], strides = [1, 1]} : vector<6x32xf32> to vector<1x32xf32>
    %128 = vector.extract_strided_slice %73 {offsets = [5, 0], sizes = [1, 32], strides = [1, 1]} : vector<6x32xf32> to vector<1x32xf32>
    %cst_50 = arith.constant dense<0.000000e+00> : vector<16xf32>
    %129 = vector.multi_reduction <add>, %126, %cst_50 [1] : vector<16x32xf32> to vector<16xf32>
    %130 = vector.shape_cast %129 : vector<16xf32> to vector<16x1xf32>
    %cst_51 = arith.constant 3.200000e+01 : f32
    %131 = vector.broadcast %cst_51 : f32 to vector<16x1xf32>
    %132 = arith.divf %130, %131 : vector<16x1xf32>
    %133 = vector.broadcast %132 : vector<16x1xf32> to vector<16x32xf32>
    %134 = arith.subf %126, %133 : vector<16x32xf32>
    %135 = arith.mulf %134, %134 : vector<16x32xf32>
    %cst_52 = arith.constant dense<0.000000e+00> : vector<16xf32>
    %136 = vector.multi_reduction <add>, %135, %cst_52 [1] : vector<16x32xf32> to vector<16xf32>
    %137 = vector.shape_cast %136 : vector<16xf32> to vector<16x1xf32>
    %cst_53 = arith.constant 3.200000e+01 : f32
    %138 = vector.broadcast %cst_53 : f32 to vector<16x1xf32>
    %139 = arith.divf %137, %138 : vector<16x1xf32>
    %140 = vector.broadcast %132 : vector<16x1xf32> to vector<16x32xf32>
    %141 = arith.subf %126, %140 : vector<16x32xf32>
    %cst_54 = arith.constant 9.99999974E-6 : f32
    %142 = vector.broadcast %cst_54 : f32 to vector<16x1xf32>
    %143 = arith.addf %139, %142 : vector<16x1xf32>
    %144 = math.rsqrt %143 : vector<16x1xf32>
    %145 = vector.broadcast %144 : vector<16x1xf32> to vector<16x32xf32>
    %146 = arith.mulf %141, %145 : vector<16x32xf32>
    %147 = vector.broadcast %127 : vector<1x32xf32> to vector<16x32xf32>
    %148 = arith.mulf %146, %147 : vector<16x32xf32>
    %149 = vector.broadcast %128 : vector<1x32xf32> to vector<16x32xf32>
    %150 = arith.addf %148, %149 : vector<16x32xf32>
    %151 = arith.truncf %150 : vector<16x32xf32> to vector<16x32xbf16>
    %c1 = arith.constant 1 : index
    %c0_55 = arith.constant 0 : index
    %c0_56 = arith.constant 0 : index
    %152 = vector.load %arg3[%c1, %c0_55, %c0_56] : memref<2x32x96xbf16, #tpu.memory_space<vmem>>, vector<1x32x96xbf16>
    %153 = vector.shape_cast %152 : vector<1x32x96xbf16> to vector<32x96xbf16>
    %cst_57 = arith.constant dense<0.000000e+00> : vector<16x96xf32>
    %154 = tpu.matmul %151, %153, %cst_57 {dimension_numbers = #tpu.dot_dimension_numbers<[1], [0], [0], [1], [0, 0, 1, 1], [], []>} : vector<16x32xbf16>, vector<32x96xbf16>, vector<16x96xf32> -> vector<16x96xf32>
    %c1_58 = arith.constant 1 : index
    %c0_59 = arith.constant 0 : index
    %c0_60 = arith.constant 0 : index
    %155 = vector.load %arg4[%c1_58, %c0_59, %c0_60] : memref<2x1x96xf32, #tpu.memory_space<vmem>>, vector<1x1x96xf32>
    %156 = vector.shape_cast %155 : vector<1x1x96xf32> to vector<1x96xf32>
    %157 = vector.broadcast %156 : vector<1x96xf32> to vector<16x96xf32>
    %158 = arith.addf %154, %157 : vector<16x96xf32>
    %159 = arith.truncf %158 : vector<16x96xf32> to vector<16x96xbf16>
    %160 = vector.shape_cast %159 : vector<16x96xbf16> to vector<2x8x96xbf16>
    %161 = vector.extract_strided_slice %160 {offsets = [0, 0, 0], sizes = [2, 8, 32], strides = [1, 1, 1]} : vector<2x8x96xbf16> to vector<2x8x32xbf16>
    %162 = vector.extract_strided_slice %160 {offsets = [0, 0, 32], sizes = [2, 8, 32], strides = [1, 1, 1]} : vector<2x8x96xbf16> to vector<2x8x32xbf16>
    %163 = vector.extract_strided_slice %160 {offsets = [0, 0, 64], sizes = [2, 8, 32], strides = [1, 1, 1]} : vector<2x8x96xbf16> to vector<2x8x32xbf16>
    %164 = vector.extract_strided_slice %161 {offsets = [0, 0, 0], sizes = [2, 8, 8], strides = [1, 1, 1]} : vector<2x8x32xbf16> to vector<2x8x8xbf16>
    %165 = vector.extract_strided_slice %162 {offsets = [0, 0, 0], sizes = [2, 8, 8], strides = [1, 1, 1]} : vector<2x8x32xbf16> to vector<2x8x8xbf16>
    "tpu.trace_start"() <{level = 10 : i32, message = "bqd,bkd->bqk"}> : () -> ()
    %cst_61 = arith.constant dense<0.000000e+00> : vector<2x8x8xf32>
    %166 = tpu.matmul %164, %165, %cst_61 {dimension_numbers = #tpu.dot_dimension_numbers<[2], [2], [1], [1], [0, 0, 0, 1, 1, 1], [0], [0]>} : vector<2x8x8xbf16>, vector<2x8x8xbf16>, vector<2x8x8xf32> -> vector<2x8x8xf32>
    "tpu.trace_stop"() : () -> ()
    %167 = vector.extract_strided_slice %161 {offsets = [0, 0, 8], sizes = [2, 8, 8], strides = [1, 1, 1]} : vector<2x8x32xbf16> to vector<2x8x8xbf16>
    %168 = vector.extract_strided_slice %162 {offsets = [0, 0, 8], sizes = [2, 8, 8], strides = [1, 1, 1]} : vector<2x8x32xbf16> to vector<2x8x8xbf16>
    "tpu.trace_start"() <{level = 10 : i32, message = "bqd,bkd->bqk"}> : () -> ()
    %cst_62 = arith.constant dense<0.000000e+00> : vector<2x8x8xf32>
    %169 = tpu.matmul %167, %168, %cst_62 {dimension_numbers = #tpu.dot_dimension_numbers<[2], [2], [1], [1], [0, 0, 0, 1, 1, 1], [0], [0]>} : vector<2x8x8xbf16>, vector<2x8x8xbf16>, vector<2x8x8xf32> -> vector<2x8x8xf32>
    "tpu.trace_stop"() : () -> ()
    %170 = vector.extract_strided_slice %161 {offsets = [0, 0, 16], sizes = [2, 8, 8], strides = [1, 1, 1]} : vector<2x8x32xbf16> to vector<2x8x8xbf16>
    %171 = vector.extract_strided_slice %162 {offsets = [0, 0, 16], sizes = [2, 8, 8], strides = [1, 1, 1]} : vector<2x8x32xbf16> to vector<2x8x8xbf16>
    "tpu.trace_start"() <{level = 10 : i32, message = "bqd,bkd->bqk"}> : () -> ()
    %cst_63 = arith.constant dense<0.000000e+00> : vector<2x8x8xf32>
    %172 = tpu.matmul %170, %171, %cst_63 {dimension_numbers = #tpu.dot_dimension_numbers<[2], [2], [1], [1], [0, 0, 0, 1, 1, 1], [0], [0]>} : vector<2x8x8xbf16>, vector<2x8x8xbf16>, vector<2x8x8xf32> -> vector<2x8x8xf32>
    "tpu.trace_stop"() : () -> ()
    %173 = vector.extract_strided_slice %161 {offsets = [0, 0, 24], sizes = [2, 8, 8], strides = [1, 1, 1]} : vector<2x8x32xbf16> to vector<2x8x8xbf16>
    %174 = vector.extract_strided_slice %162 {offsets = [0, 0, 24], sizes = [2, 8, 8], strides = [1, 1, 1]} : vector<2x8x32xbf16> to vector<2x8x8xbf16>
    "tpu.trace_start"() <{level = 10 : i32, message = "bqd,bkd->bqk"}> : () -> ()
    %cst_64 = arith.constant dense<0.000000e+00> : vector<2x8x8xf32>
    %175 = tpu.matmul %173, %174, %cst_64 {dimension_numbers = #tpu.dot_dimension_numbers<[2], [2], [1], [1], [0, 0, 0, 1, 1, 1], [0], [0]>} : vector<2x8x8xbf16>, vector<2x8x8xbf16>, vector<2x8x8xf32> -> vector<2x8x8xf32>
    "tpu.trace_stop"() : () -> ()
    %176 = tpu.concatenate %166, %169, %172, %175 in 0 : vector<2x8x8xf32>, vector<2x8x8xf32>, vector<2x8x8xf32>, vector<2x8x8xf32> -> vector<8x8x8xf32>
    %cst_65 = arith.constant 0.353553385 : f32
    %177 = vector.broadcast %cst_65 : f32 to vector<8x8x8xf32>
    %178 = arith.mulf %176, %177 : vector<8x8x8xf32>
    %179 = vector.shape_cast %15 : vector<8x8xf32> to vector<1x8x8xf32>
    %180 = vector.broadcast %179 : vector<1x8x8xf32> to vector<8x8x8xf32>
    %181 = arith.addf %178, %180 : vector<8x8x8xf32>
    %cst_66 = arith.constant dense<0xFF800000> : vector<8x8xf32>
    %182 = vector.multi_reduction <maximumf>, %181, %cst_66 [2] : vector<8x8x8xf32> to vector<8x8xf32>
    %183 = vector.shape_cast %182 : vector<8x8xf32> to vector<8x8x1xf32>
    %184 = vector.broadcast %183 : vector<8x8x1xf32> to vector<8x8x8xf32>
    %185 = arith.subf %181, %184 : vector<8x8x8xf32>
    %186 = math.exp %185 : vector<8x8x8xf32>
    %cst_67 = arith.constant dense<0.000000e+00> : vector<8x8xf32>
    %187 = vector.multi_reduction <add>, %186, %cst_67 [2] : vector<8x8x8xf32> to vector<8x8xf32>
    %188 = vector.shape_cast %187 : vector<8x8xf32> to vector<8x8x1xf32>
    %189 = tpu.reciprocal %188 {approx = true} : vector<8x8x1xf32> -> vector<8x8x1xf32>
    %190 = vector.broadcast %189 : vector<8x8x1xf32> to vector<8x8x8xf32>
    %191 = arith.mulf %186, %190 : vector<8x8x8xf32>
    %192 = arith.truncf %191 : vector<8x8x8xf32> to vector<8x8x8xbf16>
    %193 = vector.extract_strided_slice %192 {offsets = [0, 0, 0], sizes = [2, 8, 8], strides = [1, 1, 1]} : vector<8x8x8xbf16> to vector<2x8x8xbf16>
    %194 = vector.extract_strided_slice %163 {offsets = [0, 0, 0], sizes = [2, 8, 8], strides = [1, 1, 1]} : vector<2x8x32xbf16> to vector<2x8x8xbf16>
    "tpu.trace_start"() <{level = 10 : i32, message = "bqk,bkd->bqd"}> : () -> ()
    %cst_68 = arith.constant dense<0.000000e+00> : vector<2x8x8xf32>
    %195 = tpu.matmul %193, %194, %cst_68 {dimension_numbers = #tpu.dot_dimension_numbers<[2], [1], [1], [2], [0, 0, 0, 1, 1, 2], [0], [0]>} : vector<2x8x8xbf16>, vector<2x8x8xbf16>, vector<2x8x8xf32> -> vector<2x8x8xf32>
    "tpu.trace_stop"() : () -> ()
    %196 = vector.extract_strided_slice %192 {offsets = [2, 0, 0], sizes = [2, 8, 8], strides = [1, 1, 1]} : vector<8x8x8xbf16> to vector<2x8x8xbf16>
    %197 = vector.extract_strided_slice %163 {offsets = [0, 0, 8], sizes = [2, 8, 8], strides = [1, 1, 1]} : vector<2x8x32xbf16> to vector<2x8x8xbf16>
    "tpu.trace_start"() <{level = 10 : i32, message = "bqk,bkd->bqd"}> : () -> ()
    %cst_69 = arith.constant dense<0.000000e+00> : vector<2x8x8xf32>
    %198 = tpu.matmul %196, %197, %cst_69 {dimension_numbers = #tpu.dot_dimension_numbers<[2], [1], [1], [2], [0, 0, 0, 1, 1, 2], [0], [0]>} : vector<2x8x8xbf16>, vector<2x8x8xbf16>, vector<2x8x8xf32> -> vector<2x8x8xf32>
    "tpu.trace_stop"() : () -> ()
    %199 = vector.extract_strided_slice %192 {offsets = [4, 0, 0], sizes = [2, 8, 8], strides = [1, 1, 1]} : vector<8x8x8xbf16> to vector<2x8x8xbf16>
    %200 = vector.extract_strided_slice %163 {offsets = [0, 0, 16], sizes = [2, 8, 8], strides = [1, 1, 1]} : vector<2x8x32xbf16> to vector<2x8x8xbf16>
    "tpu.trace_start"() <{level = 10 : i32, message = "bqk,bkd->bqd"}> : () -> ()
    %cst_70 = arith.constant dense<0.000000e+00> : vector<2x8x8xf32>
    %201 = tpu.matmul %199, %200, %cst_70 {dimension_numbers = #tpu.dot_dimension_numbers<[2], [1], [1], [2], [0, 0, 0, 1, 1, 2], [0], [0]>} : vector<2x8x8xbf16>, vector<2x8x8xbf16>, vector<2x8x8xf32> -> vector<2x8x8xf32>
    "tpu.trace_stop"() : () -> ()
    %202 = vector.extract_strided_slice %192 {offsets = [6, 0, 0], sizes = [2, 8, 8], strides = [1, 1, 1]} : vector<8x8x8xbf16> to vector<2x8x8xbf16>
    %203 = vector.extract_strided_slice %163 {offsets = [0, 0, 24], sizes = [2, 8, 8], strides = [1, 1, 1]} : vector<2x8x32xbf16> to vector<2x8x8xbf16>
    "tpu.trace_start"() <{level = 10 : i32, message = "bqk,bkd->bqd"}> : () -> ()
    %cst_71 = arith.constant dense<0.000000e+00> : vector<2x8x8xf32>
    %204 = tpu.matmul %202, %203, %cst_71 {dimension_numbers = #tpu.dot_dimension_numbers<[2], [1], [1], [2], [0, 0, 0, 1, 1, 2], [0], [0]>} : vector<2x8x8xbf16>, vector<2x8x8xbf16>, vector<2x8x8xf32> -> vector<2x8x8xf32>
    "tpu.trace_stop"() : () -> ()
    %205 = tpu.concatenate %195, %198, %201, %204 in 2 : vector<2x8x8xf32>, vector<2x8x8xf32>, vector<2x8x8xf32>, vector<2x8x8xf32> -> vector<2x8x32xf32>
    %206 = vector.shape_cast %205 : vector<2x8x32xf32> to vector<16x32xf32>
    %c1_72 = arith.constant 1 : index
    %c0_73 = arith.constant 0 : index
    %c0_74 = arith.constant 0 : index
    %207 = vector.load %arg6[%c1_72, %c0_73, %c0_74] : memref<2x6x32xf32, #tpu.memory_space<vmem>>, vector<1x6x32xf32>
    %208 = vector.shape_cast %207 : vector<1x6x32xf32> to vector<6x32xf32>
    %209 = arith.truncf %206 : vector<16x32xf32> to vector<16x32xbf16>
    %c1_75 = arith.constant 1 : index
    %c0_76 = arith.constant 0 : index
    %c0_77 = arith.constant 0 : index
    %210 = vector.load %arg5[%c1_75, %c0_76, %c0_77] : memref<2x32x32xbf16, #tpu.memory_space<vmem>>, vector<1x32x32xbf16>
    %211 = vector.shape_cast %210 : vector<1x32x32xbf16> to vector<32x32xbf16>
    %cst_78 = arith.constant dense<0.000000e+00> : vector<16x32xf32>
    %212 = tpu.matmul %209, %211, %cst_78 {dimension_numbers = #tpu.dot_dimension_numbers<[1], [0], [0], [1], [0, 0, 1, 1], [], []>} : vector<16x32xbf16>, vector<32x32xbf16>, vector<16x32xf32> -> vector<16x32xf32>
    %213 = vector.extract_strided_slice %208 {offsets = [0, 0], sizes = [1, 32], strides = [1, 1]} : vector<6x32xf32> to vector<1x32xf32>
    %214 = vector.broadcast %213 : vector<1x32xf32> to vector<16x32xf32>
    %215 = arith.addf %212, %214 : vector<16x32xf32>
    %216 = arith.addf %150, %215 : vector<16x32xf32>
    %217 = vector.extract_strided_slice %208 {offsets = [2, 0], sizes = [1, 32], strides = [1, 1]} : vector<6x32xf32> to vector<1x32xf32>
    %218 = vector.extract_strided_slice %208 {offsets = [3, 0], sizes = [1, 32], strides = [1, 1]} : vector<6x32xf32> to vector<1x32xf32>
    %cst_79 = arith.constant dense<0.000000e+00> : vector<16xf32>
    %219 = vector.multi_reduction <add>, %216, %cst_79 [1] : vector<16x32xf32> to vector<16xf32>
    %220 = vector.shape_cast %219 : vector<16xf32> to vector<16x1xf32>
    %cst_80 = arith.constant 3.200000e+01 : f32
    %221 = vector.broadcast %cst_80 : f32 to vector<16x1xf32>
    %222 = arith.divf %220, %221 : vector<16x1xf32>
    %223 = vector.broadcast %222 : vector<16x1xf32> to vector<16x32xf32>
    %224 = arith.subf %216, %223 : vector<16x32xf32>
    %225 = arith.mulf %224, %224 : vector<16x32xf32>
    %cst_81 = arith.constant dense<0.000000e+00> : vector<16xf32>
    %226 = vector.multi_reduction <add>, %225, %cst_81 [1] : vector<16x32xf32> to vector<16xf32>
    %227 = vector.shape_cast %226 : vector<16xf32> to vector<16x1xf32>
    %cst_82 = arith.constant 3.200000e+01 : f32
    %228 = vector.broadcast %cst_82 : f32 to vector<16x1xf32>
    %229 = arith.divf %227, %228 : vector<16x1xf32>
    %230 = vector.broadcast %222 : vector<16x1xf32> to vector<16x32xf32>
    %231 = arith.subf %216, %230 : vector<16x32xf32>
    %cst_83 = arith.constant 9.99999974E-6 : f32
    %232 = vector.broadcast %cst_83 : f32 to vector<16x1xf32>
    %233 = arith.addf %229, %232 : vector<16x1xf32>
    %234 = math.rsqrt %233 : vector<16x1xf32>
    %235 = vector.broadcast %234 : vector<16x1xf32> to vector<16x32xf32>
    %236 = arith.mulf %231, %235 : vector<16x32xf32>
    %237 = vector.broadcast %217 : vector<1x32xf32> to vector<16x32xf32>
    %238 = arith.mulf %236, %237 : vector<16x32xf32>
    %239 = vector.broadcast %218 : vector<1x32xf32> to vector<16x32xf32>
    %240 = arith.addf %238, %239 : vector<16x32xf32>
    %241 = arith.truncf %240 : vector<16x32xf32> to vector<16x32xbf16>
    %c1_84 = arith.constant 1 : index
    %c0_85 = arith.constant 0 : index
    %c0_86 = arith.constant 0 : index
    %242 = vector.load %arg7[%c1_84, %c0_85, %c0_86] : memref<2x32x64xbf16, #tpu.memory_space<vmem>>, vector<1x32x64xbf16>
    %243 = vector.shape_cast %242 : vector<1x32x64xbf16> to vector<32x64xbf16>
    %cst_87 = arith.constant dense<0.000000e+00> : vector<16x64xf32>
    %244 = tpu.matmul %241, %243, %cst_87 {dimension_numbers = #tpu.dot_dimension_numbers<[1], [0], [0], [1], [0, 0, 1, 1], [], []>} : vector<16x32xbf16>, vector<32x64xbf16>, vector<16x64xf32> -> vector<16x64xf32>
    %c1_88 = arith.constant 1 : index
    %c0_89 = arith.constant 0 : index
    %c0_90 = arith.constant 0 : index
    %245 = vector.load %arg8[%c1_88, %c0_89, %c0_90] : memref<2x1x64xf32, #tpu.memory_space<vmem>>, vector<1x1x64xf32>
    %246 = vector.shape_cast %245 : vector<1x1x64xf32> to vector<1x64xf32>
    %247 = vector.broadcast %246 : vector<1x64xf32> to vector<16x64xf32>
    %248 = arith.addf %244, %247 : vector<16x64xf32>
    %cst_91 = arith.constant 0.000000e+00 : f32
    %249 = vector.broadcast %cst_91 : f32 to vector<16x64xf32>
    %250 = arith.cmpf ogt, %248, %249 : vector<16x64xf32>
    %cst_92 = arith.constant 2.000000e-01 : f32
    %251 = vector.broadcast %cst_92 : f32 to vector<16x64xf32>
    %252 = arith.mulf %251, %248 : vector<16x64xf32>
    %253 = arith.select %250, %248, %252 : vector<16x64xi1>, vector<16x64xf32>
    %254 = arith.truncf %253 : vector<16x64xf32> to vector<16x64xbf16>
    %c1_93 = arith.constant 1 : index
    %c0_94 = arith.constant 0 : index
    %c0_95 = arith.constant 0 : index
    %255 = vector.load %arg9[%c1_93, %c0_94, %c0_95] : memref<2x64x32xbf16, #tpu.memory_space<vmem>>, vector<1x64x32xbf16>
    %256 = vector.shape_cast %255 : vector<1x64x32xbf16> to vector<64x32xbf16>
    %cst_96 = arith.constant dense<0.000000e+00> : vector<16x32xf32>
    %257 = tpu.matmul %254, %256, %cst_96 {dimension_numbers = #tpu.dot_dimension_numbers<[1], [0], [0], [1], [0, 0, 1, 1], [], []>} : vector<16x64xbf16>, vector<64x32xbf16>, vector<16x32xf32> -> vector<16x32xf32>
    %258 = vector.extract_strided_slice %208 {offsets = [1, 0], sizes = [1, 32], strides = [1, 1]} : vector<6x32xf32> to vector<1x32xf32>
    %259 = vector.broadcast %258 : vector<1x32xf32> to vector<16x32xf32>
    %260 = arith.addf %257, %259 : vector<16x32xf32>
    %261 = arith.addf %240, %260 : vector<16x32xf32>
    %262 = vector.extract_strided_slice %208 {offsets = [4, 0], sizes = [1, 32], strides = [1, 1]} : vector<6x32xf32> to vector<1x32xf32>
    %263 = vector.extract_strided_slice %208 {offsets = [5, 0], sizes = [1, 32], strides = [1, 1]} : vector<6x32xf32> to vector<1x32xf32>
    %cst_97 = arith.constant dense<0.000000e+00> : vector<16xf32>
    %264 = vector.multi_reduction <add>, %261, %cst_97 [1] : vector<16x32xf32> to vector<16xf32>
    %265 = vector.shape_cast %264 : vector<16xf32> to vector<16x1xf32>
    %cst_98 = arith.constant 3.200000e+01 : f32
    %266 = vector.broadcast %cst_98 : f32 to vector<16x1xf32>
    %267 = arith.divf %265, %266 : vector<16x1xf32>
    %268 = vector.broadcast %267 : vector<16x1xf32> to vector<16x32xf32>
    %269 = arith.subf %261, %268 : vector<16x32xf32>
    %270 = arith.mulf %269, %269 : vector<16x32xf32>
    %cst_99 = arith.constant dense<0.000000e+00> : vector<16xf32>
    %271 = vector.multi_reduction <add>, %270, %cst_99 [1] : vector<16x32xf32> to vector<16xf32>
    %272 = vector.shape_cast %271 : vector<16xf32> to vector<16x1xf32>
    %cst_100 = arith.constant 3.200000e+01 : f32
    %273 = vector.broadcast %cst_100 : f32 to vector<16x1xf32>
    %274 = arith.divf %272, %273 : vector<16x1xf32>
    %275 = vector.broadcast %267 : vector<16x1xf32> to vector<16x32xf32>
    %276 = arith.subf %261, %275 : vector<16x32xf32>
    %cst_101 = arith.constant 9.99999974E-6 : f32
    %277 = vector.broadcast %cst_101 : f32 to vector<16x1xf32>
    %278 = arith.addf %274, %277 : vector<16x1xf32>
    %279 = math.rsqrt %278 : vector<16x1xf32>
    %280 = vector.broadcast %279 : vector<16x1xf32> to vector<16x32xf32>
    %281 = arith.mulf %276, %280 : vector<16x32xf32>
    %282 = vector.broadcast %262 : vector<1x32xf32> to vector<16x32xf32>
    %283 = arith.mulf %281, %282 : vector<16x32xf32>
    %284 = vector.broadcast %263 : vector<1x32xf32> to vector<16x32xf32>
    %285 = arith.addf %283, %284 : vector<16x32xf32>
    %c0_102 = arith.constant 0 : index
    %c0_103 = arith.constant 0 : index
    %286 = vector.load %arg11[%c0_102, %c0_103] : memref<3x64xf32, #tpu.memory_space<vmem>>, vector<3x64xf32>
    %287 = arith.truncf %285 : vector<16x32xf32> to vector<16x32xbf16>
    %c0_104 = arith.constant 0 : index
    %c0_105 = arith.constant 0 : index
    %288 = vector.load %arg10[%c0_104, %c0_105] : memref<32x64xbf16, #tpu.memory_space<vmem>>, vector<32x64xbf16>
    %cst_106 = arith.constant dense<0.000000e+00> : vector<16x64xf32>
    %289 = tpu.matmul %287, %288, %cst_106 {dimension_numbers = #tpu.dot_dimension_numbers<[1], [0], [0], [1], [0, 0, 1, 1], [], []>} : vector<16x32xbf16>, vector<32x64xbf16>, vector<16x64xf32> -> vector<16x64xf32>
    %290 = vector.extract_strided_slice %286 {offsets = [0, 0], sizes = [1, 64], strides = [1, 1]} : vector<3x64xf32> to vector<1x64xf32>
    %291 = vector.broadcast %290 : vector<1x64xf32> to vector<16x64xf32>
    %292 = arith.addf %289, %291 : vector<16x64xf32>
    %293 = vector.extract_strided_slice %286 {offsets = [1, 0], sizes = [1, 64], strides = [1, 1]} : vector<3x64xf32> to vector<1x64xf32>
    %294 = vector.extract_strided_slice %286 {offsets = [2, 0], sizes = [1, 64], strides = [1, 1]} : vector<3x64xf32> to vector<1x64xf32>
    %cst_107 = arith.constant dense<0.000000e+00> : vector<16xf32>
    %295 = vector.multi_reduction <add>, %292, %cst_107 [1] : vector<16x64xf32> to vector<16xf32>
    %296 = vector.shape_cast %295 : vector<16xf32> to vector<16x1xf32>
    %cst_108 = arith.constant 6.400000e+01 : f32
    %297 = vector.broadcast %cst_108 : f32 to vector<16x1xf32>
    %298 = arith.divf %296, %297 : vector<16x1xf32>
    %299 = vector.broadcast %298 : vector<16x1xf32> to vector<16x64xf32>
    %300 = arith.subf %292, %299 : vector<16x64xf32>
    %301 = arith.mulf %300, %300 : vector<16x64xf32>
    %cst_109 = arith.constant dense<0.000000e+00> : vector<16xf32>
    %302 = vector.multi_reduction <add>, %301, %cst_109 [1] : vector<16x64xf32> to vector<16xf32>
    %303 = vector.shape_cast %302 : vector<16xf32> to vector<16x1xf32>
    %cst_110 = arith.constant 6.400000e+01 : f32
    %304 = vector.broadcast %cst_110 : f32 to vector<16x1xf32>
    %305 = arith.divf %303, %304 : vector<16x1xf32>
    %306 = vector.broadcast %298 : vector<16x1xf32> to vector<16x64xf32>
    %307 = arith.subf %292, %306 : vector<16x64xf32>
    %cst_111 = arith.constant 9.99999974E-6 : f32
    %308 = vector.broadcast %cst_111 : f32 to vector<16x1xf32>
    %309 = arith.addf %305, %308 : vector<16x1xf32>
    %310 = math.rsqrt %309 : vector<16x1xf32>
    %311 = vector.broadcast %310 : vector<16x1xf32> to vector<16x64xf32>
    %312 = arith.mulf %307, %311 : vector<16x64xf32>
    %313 = vector.broadcast %293 : vector<1x64xf32> to vector<16x64xf32>
    %314 = arith.mulf %312, %313 : vector<16x64xf32>
    %315 = vector.broadcast %294 : vector<1x64xf32> to vector<16x64xf32>
    %316 = arith.addf %314, %315 : vector<16x64xf32>
    %cst_112 = arith.constant 0.000000e+00 : f32
    %317 = vector.broadcast %cst_112 : f32 to vector<16x64xf32>
    %318 = arith.cmpf ogt, %316, %317 : vector<16x64xf32>
    %cst_113 = arith.constant 2.000000e-01 : f32
    %319 = vector.broadcast %cst_113 : f32 to vector<16x64xf32>
    %320 = arith.mulf %319, %316 : vector<16x64xf32>
    %321 = arith.select %318, %316, %320 : vector<16x64xi1>, vector<16x64xf32>
    %322 = arith.truncf %321 : vector<16x64xf32> to vector<16x64xbf16>
    %c0_114 = arith.constant 0 : index
    %c0_115 = arith.constant 0 : index
    %323 = vector.load %arg12[%c0_114, %c0_115] : memref<64x8xbf16, #tpu.memory_space<vmem>>, vector<64x8xbf16>
    %cst_116 = arith.constant dense<0.000000e+00> : vector<16x8xf32>
    %324 = tpu.matmul %322, %323, %cst_116 {dimension_numbers = #tpu.dot_dimension_numbers<[1], [0], [0], [1], [0, 0, 1, 1], [], []>} : vector<16x64xbf16>, vector<64x8xbf16>, vector<16x8xf32> -> vector<16x8xf32>
    %c0_117 = arith.constant 0 : index
    %c0_118 = arith.constant 0 : index
    %325 = vector.load %arg13[%c0_117, %c0_118] : memref<1x8xf32, #tpu.memory_space<vmem>>, vector<1x8xf32>
    %326 = vector.broadcast %325 : vector<1x8xf32> to vector<16x8xf32>
    %327 = arith.addf %324, %326 : vector<16x8xf32>
    %328 = vector.extract_strided_slice %0 {offsets = [0, 0], sizes = [16, 8], strides = [1, 1]} : vector<16x24xf32> to vector<16x8xf32>
    %329 = arith.addf %328, %327 : vector<16x8xf32>
    %330 = vector.extract_strided_slice %0 {offsets = [0, 8], sizes = [16, 8], strides = [1, 1]} : vector<16x24xf32> to vector<16x8xf32>
    %331 = arith.subf %327, %330 : vector<16x8xf32>
    %332 = tpu.concatenate %329, %327, %331 in 1 : vector<16x8xf32>, vector<16x8xf32>, vector<16x8xf32> -> vector<16x24xf32>
    %c0_119 = arith.constant 0 : index
    %c0_120 = arith.constant 0 : index
    %333 = vector.load %arg14[%c0_119, %c0_120] : memref<16x24xf32, #tpu.memory_space<vmem>>, vector<16x24xf32>
    tpu.vector_store %arg14[%c0_119, %c0_120], %332 {strides = array<i32>} : memref<16x24xf32, #tpu.memory_space<vmem>>, vector<16x24xf32>,
    return
  }
}

</mosaic_0001>

<bundles_post_ra>
// kernel: tpu_custom_call.1
= control target key start
LH: loop header
LB: loop body
LE: loop exit
PB: predicated region body
PF: predicated region fallthrough
CT: control target
= control target key end

     0   :  { %19 = vsyncpa [#allocation3], 0  ;;  %s2992_s0 = inlined_call_operand.vmem [shape: f32[16,24], index: 0, kind: input, shape index: {}]   ;;  %s2993_s1 = inlined_call_operand.hbm [shape: bf16[24,32], index: 1, kind: input, shape index: {}]   ;;  %s2994_s2 = inlined_call_operand.hbm [shape: f32[8,32], index: 2, kind: input, shape index: {}]   ;;  %s2995_s3 = inlined_call_operand.vmem [shape: bf16[2,32,96], index: 3, kind: input, shape index: {}]   ;;  %s2996_s4 = inlined_call_operand.hbm [shape: f32[2,1,96], index: 4, kind: input, shape index: {}]   ;;  %s2997_s5 = inlined_call_operand.vmem [shape: bf16[2,32,32], index: 5, kind: input, shape index: {}]   ;;  %s2998_s6 = inlined_call_operand.vmem [shape: f32[2,6,32], index: 6, kind: input, shape index: {}]   ;;  %s2999_s7 = inlined_call_operand.vmem [shape: bf16[2,32,64], index: 7, kind: input, shape index: {}]   ;;  %s3000_s8 = inlined_call_operand.hbm [shape: f32[2,1,64], index: 8, kind: input, shape index: {}]   ;;  %s3001_s9 = inlined_call_operand.vmem [shape: bf16[2,64,32], index: 9, kind: input, shape index: {}]   ;;  %s3002_s10 = inlined_call_operand.vmem [shape: bf16[32,64], index: 10, kind: input, shape index: {}]   ;;  %s3003_s11 = inlined_call_operand.vmem [shape: f32[3,64], index: 11, kind: input, shape index: {}]   ;;  %s3004_s12 = inlined_call_operand.vmem [shape: bf16[64,8], index: 12, kind: input, shape index: {}]   ;;  %s3005_s13 = inlined_call_operand.vmem [shape: f32[1,8], index: 13, kind: input, shape index: {}]   ;;  %s3006_s14 = inlined_call_operand.hbm [shape: f32[16,24], index: 14, kind: output, shape index: {}]  }
   0x1   :  { %20 = vsyncpa [#allocation6], 0 }
   0x2   :  { %21 = vsyncpa [#allocation9], 0  ;;  %s43_s15 = sshll.u32 %s2994_s2, 4  ;;  %s44_s15 = int_to_ptr.hbm [resolvable:$true] %s43_s15 }
   0x3   :  { %22 = vsyncpa [#allocation4], 0  ;;  %s2401_s16 = smov [#allocation5]   ;;  %s29_s20 = sshll.u32 %s2993_s1, 4  ;;  %s30_s20 = int_to_ptr.hbm [resolvable:$true] %s29_s20 }
   0x4   :  { %s45_s17 = sshll.u32 %s2401_s16, 4  ;;  %s2402_s21 = smov [#allocation2]   ;;  %s46_s17 = int_to_ptr.vmem [resolvable:$true] %s45_s17 }
   0x5   :  { %48 = dma.hbm_to_vmem [thread:$0]  %s44_s15, 128, %s46_s17, [#allocation6]  }
   0x6   :  { %s31_s22 = sshll.u32 %s2402_s21, 4  ;;  %s2403_s23 = smov 64   ;;  %s32_s22 = int_to_ptr.vmem [resolvable:$true] %s31_s22 }
   0x7   :  { %s2404_s24 = smov 4   ;;  %s55_s26 = sshll.u32 %s2996_s4, 4  ;;  %s56_s26 = int_to_ptr.hbm [resolvable:$true] %s55_s26 }
   0x8   :  { %37 = dma.hbm_to_vmem [thread:$0]  %s30_s20, 192, %s32_s22, [#allocation3], %s2403_s23, %s2403_s23, %s2404_s24  }
   0x9   :  { %s2405_s27 = smov [#allocation7]   ;;  %s74_s30 = sshll.u32 %s3000_s8, 4  ;;  %s75_s30 = int_to_ptr.hbm [resolvable:$true] %s74_s30 }
   0xa   :  { %s57_s28 = sshll.u32 %s2405_s27, 4  ;;  %s3008_s15 = smov 16   ;;  %s58_s28 = int_to_ptr.vmem [resolvable:$true] %s57_s28 }
   0xb   :  { %s2407_s16 = smov 1   ;;  %s2408_s17 = smov [#allocation8]  }
   0xc   :  { %63 = dma.hbm_to_vmem [thread:$0]  %s56_s26, 32, %s58_s28, [#allocation6], %s3008_s15, %s3008_s15, %s2407_s16  }
   0xd   :  { %s76_s18 = sshll.u32 %s2408_s17, 4  ;;  %s77_s18 = int_to_ptr.vmem [resolvable:$true] %s76_s18 }
   0xe   :  { %82 = dma.hbm_to_vmem [thread:$0]  %s75_s30, 32, %s77_s18, [#allocation9], %s3008_s15, %s3008_s15, %s2407_s16  }
   0xf   :  { %2393 = dma.done.wait [#allocation3], 192  }
  0x10   :  { %2394 = vsyncadd [#allocation3], 4294967104 }
  0x11   :  { %2395 = dma.done.wait [#allocation6], 160  }
  0x12   :  { %2396 = vsyncadd [#allocation6], 4294967136 }
  0x13   :  { %2397 = dma.done.wait [#allocation9], 32  }
  0x14   :  { %2398 = vsyncadd [#allocation9], 4294967264  ;;  %v115_v0 = vld [vmem:[#allocation2 + $0x8] sm:$0xf]  ;;  %vm129_vm0 = vcmask 1043456   ;;  %v2096_v4 = vld [vmem:[#allocation2] sm:$0xff]  ;;  %v150_v53 = vlaneseq }
  0x15   :  { %v121_v1 = vunpack.c.l.b16 %v115_v0  ;;  %v110_v5 = vld [vmem:[%s2992_s0] sm:$0xff]  ;;  %v111_v6 = vld [vmem:[%s2992_s0 + $0x8] sm:$0xff]  ;;  %vm125_vm1 = vcmask 195584   ;;  %vm177_vm2 = vcmask 261120   ;;  %v2178_v16 = vld [vmem:[#allocation7] ss:$0 sm:$0xff] }
  0x16   :  { %v112_v7 = vpack.c.bf16 %v111_v6, %v110_v5  ;;  %v2098_v8 = vld [vmem:[%s2995_s3 + $0x8] sm:$0xff]  ;;  %v2097_v9 = vld [vmem:[%s2995_s3] sm:$0xff]  ;;  %s2409_s25 = smov 80   ;;  %s2410_s26 = smov 88   ;;  %vm202_vm3 = vcmask 64512   ;;  %v151_v54 = vshrl.u32 %v150_v53, 7 }
  0x17   :  { %v123_v2 = vpack.c.b16 %v121_v1, %v121_v1  ;;  %187 = vmatpush.bf16.msra.mxu1 %v2098_v8  ;;  %v147_v11 = vld [vmem:[#allocation5] sm:$0xff]  ;;  %s2411_s27 = smov 96   ;;  %s2412_s28 = smov 112   ;;  %v153_v55 = vand.u32 127, %v150_v53  ;;  %v2416_v57 = vmov 0.0   ;;  %vm690_vm5 = vcmask 130048  }
  0x18   :  { %s2413_s29 = smov 120   ;;  %s2414_s1 = smov 72   ;;  %vm868_vm15 = vcmask 523264  }
  0x19   :  { %v131_v3 = vsel %vm129_vm0, %v123_v2, 0  ;;  %s2415_s30 = smov 104   ;;  %vm154_vm4 = vcmp.gt.s32.totalorder %v153_v55, %v151_v54  ;;  %s2417_s16 = smov 56  }
  0x1a   :  { %139 = vmatpush.bf16.msra.mxu0 %v131_v3  ;;  %v2594_v58 = vsel %vm154_vm4, -1e+30, %v2416_v57  ;;  %s2418_s17 = smov 48   ;;  %s2419_s18 = smov 40  }
  0x1b   :  { %188 = vmatpush.bf16.msra.mxu1 %v2097_v9  ;;  %s2420_s4 = smov 8   ;;  %s3007_s8 = smov 24  }
  0x1c   :  { %s1909_s21 = sshll.u32 %s3006_s14, 4  ;;  %s2425_s14 = smov 128   ;;  %s1910_s21 = int_to_ptr.hbm [resolvable:$true] %s1909_s21 }
  0x1e   :  { %140 = vmatpush.bf16.msra.mxu0 %v2096_v4 }
  0x21   :  { %1928 = vmatmul.msk.bf16.vlgmr.msra.gmra.mxu0 %vm125_vm1, %v112_v7 }
  0x9e   :  { %v142_v10 = vpop.f32.mrf.mxu0 }
  0x9f   :  { %v2533_v13 = vadd.f32 %v147_v11, %v142_v10 }
  0xa6   :  { %v144_v12 = vpop.f32.mrf.mxu0 }
  0xa7   :  { %v2535_v14 = vadd.f32 %v147_v11, %v144_v12 }
  0xa9   :  { %v156_v15 = vpack.c.bf16 %v2535_v14, %v2533_v13 }
  0xab   :  { %1937 = vmatmul.msk.bf16.vlgmr.msra.gmra.mxu1 %vm177_vm2, %v156_v15 }
 0x128   :  { %v190_v17 = vpop.f32.mrf.mxu1 }
 0x129   :  { %v191_v18 = vadd.f32 %v2178_v16, %v190_v17 }
 0x12b   :  { %v195_v19 = vpack.c.bf16 %v191_v18, %v191_v18 }
 0x12d   :  { %v198_v20 = vunpack.c.l.b16 %v195_v19 }
 0x12f   :  { %v2540_v21 = vpack.c.b16 %v198_v20, %v198_v20 }
 0x130   :  { %v192_v22 = vpop.f32.mrf.mxu1 }
 0x131   :  { %v193_v23 = vadd.f32 %v2178_v16, %v192_v22  ;;  %294 = vrot.lane.b32.xlu2 %v2540_v21, %s2409_s25  ;;  %248 = vrot.lane.b32.xlu1 %v2540_v21, %s2410_s26 }
 0x132   :  { %200 = vrot.lane.b32.xlu0 %v2540_v21, %s2411_s27 }
 0x133   :  { %v196_v24 = vpack.c.bf16 %v193_v23, %v193_v23 }
 0x135   :  { %v223_v25 = vunpack.c.l.b16 %v196_v24 }
 0x137   :  { %v2548_v26 = vpack.c.b16 %v223_v25, %v223_v25 }
 0x139   :  { %317 = vrot.lane.b32.xlu2 %v2548_v26, %s2409_s25  ;;  %271 = vrot.lane.b32.xlu1 %v2548_v26, %s2410_s26 }
 0x13a   :  { %225 = vrot.lane.b32.xlu0 %v2548_v26, %s2411_s27 }
 0x141   :  { %292 = vrot.lane.b32.xlu2 %v2540_v21, %s2412_s28  ;;  %269 = vrot.lane.b32.xlu1 %v2548_v26, %s2413_s29 }
 0x142   :  { %246 = vrot.lane.b32.xlu0 %v2540_v21, %s2413_s29 }
 0x149   :  { %363 = vrot.lane.b32.xlu2 %v2548_v26, %s2414_s1  ;;  %340 = vrot.lane.b32.xlu1 %v2540_v21, %s2414_s1 }
 0x14a   :  { %315 = vrot.lane.b32.xlu0 %v2548_v26, %s2412_s28 }
 0x151   :  { %517 = vrot.lane.b32.xlu2 %v2548_v26, %s2403_s23  ;;  %361 = vrot.lane.b32.xlu1 %v2548_v26, %s2415_s30 }
 0x152   :  { %338 = vrot.lane.b32.xlu0 %v2540_v21, %s2415_s30 }
 0x159   :  { %496 = vrot.lane.b32.xlu1 %v2540_v21, %s2403_s23 }
 0x18b   :  { %v295_v27 = vpop.permute.xlu2 %294 }
 0x18c   :  { %v300_v34 = vsel %vm202_vm3, %v295_v27, 0 }
 0x193   :  { %v318_v28 = vpop.permute.xlu2 %317 }
 0x194   :  { %v323_v41 = vsel %vm202_vm3, %v318_v28, 0 }
 0x19b   :  { %v293_v29 = vpop.permute.xlu2 %292 }
 0x1a3   :  { %v249_v30 = vpop.permute.xlu1 %248  ;;  %v364_v35 = vpop.permute.xlu2 %363 }
 0x1a4   :  { %v201_v31 = vpop.permute.xlu0 %200  ;;  %v254_v32 = vsel %vm202_vm3, %v249_v30, 0  ;;  %v369_v39 = vsel %vm202_vm3, %v364_v35, 0 }
 0x1a5   :  { %v207_v33 = vsel %vm202_vm3, %v201_v31, 0  ;;  %263 = vmatpush.bf16.xpose.msrb.mxu0 %v254_v32 }
 0x1a6   :  { %216 = vmatpush.bf16.xpose.msra.mxu2 %v207_v33 }
 0x1ab   :  { %v272_v36 = vpop.permute.xlu1 %271  ;;  %v518_v42 = vpop.permute.xlu2 %517 }
 0x1ac   :  { %v226_v37 = vpop.permute.xlu0 %225  ;;  %v277_v38 = vsel %vm202_vm3, %v272_v36, 0  ;;  %v523_v45 = vsel %vm129_vm0, %v518_v42, 0 }
 0x1ad   :  { %1938 = vmatmul.msk.bf16.vlgmr.msra.gmra.mxu2 %vm202_vm3, %v195_v19  ;;  %v231_v40 = vsel %vm202_vm3, %v226_v37, 0  ;;  %286 = vmatpush.bf16.xpose.msrb.mxu1 %v277_v38 }
 0x1ae   :  { %309 = vmatpush.bf16.xpose.msrb.mxu2 %v300_v34  ;;  %240 = vmatpush.bf16.xpose.msra.mxu3 %v231_v40 }
 0x1b3   :  { %v270_v43 = vpop.permute.xlu1 %269 }
 0x1b4   :  { %v247_v44 = vpop.permute.xlu0 %246  ;;  %1941 = vmatmul.msk.bf16.vlgmr.msrb.gmra.mxu1 %vm202_vm3, %v270_v43 }
 0x1b5   :  { %378 = vmatpush.bf16.xpose.msra.mxu1 %v369_v39  ;;  %1939 = vmatmul.msk.bf16.vlgmr.msra.gmra.mxu3 %vm202_vm3, %v196_v24 }
 0x1b6   :  { %332 = vmatpush.bf16.xpose.msrb.mxu3 %v323_v41  ;;  %1940 = vmatmul.msk.bf16.vlgmr.msrb.gmra.mxu0 %vm202_vm3, %v247_v44 }
 0x1bb   :  { %v341_v46 = vpop.permute.xlu1 %340 }
 0x1bc   :  { %v346_v47 = vsel %vm202_vm3, %v341_v46, 0  ;;  %v316_v48 = vpop.permute.xlu0 %315 }
 0x1bd   :  { %1942 = vmatmul.msk.bf16.vlgmr.msrb.gmra.mxu2 %vm202_vm3, %v293_v29  ;;  %355 = vmatpush.bf16.xpose.msra.mxu0 %v346_v47 }
 0x1be   :  { %532 = vmatpush.bf16.msra.mxu3 %v523_v45 }
 0x1c3   :  { %v362_v49 = vpop.permute.xlu1 %361 }
 0x1c4   :  { %v339_v50 = vpop.permute.xlu0 %338  ;;  %1945 = vmatmul.msk.bf16.vlgmr.msra.gmra.mxu1 %vm202_vm3, %v362_v49 }
 0x1c5   :  { %1943 = vmatmul.msk.bf16.vlgmr.msrb.gmra.mxu3 %vm202_vm3, %v316_v48 }
 0x1c6   :  { %1944 = vmatmul.msk.bf16.vlgmr.msra.gmra.mxu0 %vm202_vm3, %v339_v50 }
 0x1cb   :  { %v497_v51 = vpop.permute.xlu1 %496 }
 0x1cc   :  { %v502_v52 = vsel %vm129_vm0, %v497_v51, 0 }
 0x1cd   :  { %511 = vmatpush.bf16.msra.mxu2 %v502_v52 }
 0x230   :  { %v218_v56 = vpop.f32.mrf.mxu2 }
 0x231   :  { %v384_v59 = vmul.f32 0.35355338, %v218_v56  ;;  %v288_v60 = vpop.f32.mrf.mxu1 }
 0x232   :  { %v387_v0 = vmul.f32 0.35355338, %v288_v60 }
 0x233   :  { %v265_v61 = vpop.f32.mrf.mxu0  ;;  %v392_v63 = vadd.f32 %v384_v59, %v2594_v58 }
 0x234   :  { %v386_v62 = vmul.f32 0.35355338, %v265_v61  ;;  %v395_v8 = vadd.f32 %v387_v0, %v2594_v58 }
 0x235   :  { %v400_v1 = vsel %vm202_vm3, %v392_v63, -inf }
 0x236   :  { %v394_v2 = vadd.f32 %v386_v62, %v2594_v58  ;;  %401 = vmax.xlane.f32.xlu2 %v400_v1  ;;  %v409_v11 = vsel %vm202_vm3, %v395_v8, -inf }
 0x238   :  { %v406_v3 = vsel %vm202_vm3, %v394_v2, -inf  ;;  %v220_v4 = vpop.f32.mrf.mxu2  ;;  %v242_v5 = vpop.f32.mrf.mxu3 }
 0x239   :  { %407 = vmax.xlane.f32.xlu1 %v406_v3  ;;  %v385_v6 = vmul.f32 0.35355338, %v242_v5  ;;  %v290_v7 = vpop.f32.mrf.mxu1 }
 0x23b   :  { %v267_v9 = vpop.f32.mrf.mxu0  ;;  %v393_v10 = vadd.f32 %v385_v6, %v2594_v58 }
 0x23d   :  { %v403_v12 = vsel %vm202_vm3, %v393_v10, -inf }
 0x23e   :  { %410 = vmax.xlane.f32.xlu2 %v409_v11  ;;  %404 = vmax.xlane.f32.xlu0 %v403_v12 }
 0x240   :  { %v244_v15 = vpop.f32.mrf.mxu3  ;;  %v311_v16 = vpop.f32.mrf.mxu2 }
 0x241   :  { %v388_v17 = vmul.f32 0.35355338, %v311_v16  ;;  %v380_v18 = vpop.f32.mrf.mxu1 }
 0x242   :  { %v391_v22 = vmul.f32 0.35355338, %v380_v18 }
 0x243   :  { %v357_v19 = vpop.f32.mrf.mxu0  ;;  %v396_v20 = vadd.f32 %v388_v17, %v2594_v58 }
 0x244   :  { %v399_v28 = vadd.f32 %v391_v22, %v2594_v58  ;;  %v390_v32 = vmul.f32 0.35355338, %v357_v19 }
 0x245   :  { %v412_v23 = vsel %vm202_vm3, %v396_v20, -inf }
 0x246   :  { %413 = vmax.xlane.f32.xlu2 %v412_v23  ;;  %v421_v30 = vsel %vm202_vm3, %v399_v28, -inf  ;;  %v2615_v34 = vadd.f32 %v390_v32, %v2594_v58 }
 0x248   :  { %v313_v24 = vpop.f32.mrf.mxu2  ;;  %v334_v25 = vpop.f32.mrf.mxu3  ;;  %v418_v36 = vsel %vm202_vm3, %v2615_v34, -inf }
 0x249   :  { %v382_v27 = vpop.f32.mrf.mxu1  ;;  %v389_v33 = vmul.f32 0.35355338, %v334_v25 }
 0x24b   :  { %v359_v29 = vpop.f32.mrf.mxu0  ;;  %v2618_v35 = vadd.f32 %v389_v33, %v2594_v58 }
 0x24d   :  { %v415_v37 = vsel %vm202_vm3, %v2618_v35, -inf }
 0x24e   :  { %422 = vmax.xlane.f32.xlu2 %v421_v30 }
 0x250   :  { %v336_v31 = vpop.f32.mrf.mxu3 }
 0x252   :  { %559 = vrot.lane.b32.xlu1 %v2548_v26, %s2417_s16  ;;  %538 = vrot.lane.b32.xlu0 %v2540_v21, %s2417_s16 }
 0x266   :  { %580 = vrot.lane.b32.xlu2 %v2540_v21, %s2418_s17 }
 0x27c   :  { %419 = vmax.xlane.f32.xlu1 %v418_v36  ;;  %416 = vmax.xlane.f32.xlu0 %v415_v37 }
 0x2a9   :  { %v402_v38 = vpop.xlane.xlu2 %401 }
 0x2aa   :  { %v424_v39 = vsub.f32 %v392_v63, %v402_v38 }
 0x2ac   :  { %v408_v40 = vpop.xlane.xlu1 %407  ;;  %v432_v41 = vmul.f32 1.442695, %v424_v39 }
 0x2ad   :  { %v426_v42 = vsub.f32 %v394_v2, %v408_v40 }
 0x2ae   :  { %2183 = vpow2.f32 %v432_v41 }
 0x2af   :  { %v436_v43 = vmul.f32 1.442695, %v426_v42 }
 0x2b1   :  { %2185 = vpow2.f32 %v436_v43  ;;  %v411_v44 = vpop.xlane.xlu2 %410  ;;  %v405_v45 = vpop.xlane.xlu0 %404 }
 0x2b2   :  { %v427_v46 = vsub.f32 %v395_v8, %v411_v44  ;;  %v425_v47 = vsub.f32 %v393_v10, %v405_v45 }
 0x2b4   :  { %v2184_v48 = vpop.eup %2183  ;;  %v438_v49 = vmul.f32 1.442695, %v427_v46  ;;  %v434_v50 = vmul.f32 1.442695, %v425_v47 }
 0x2b5   :  { %v448_v51 = vsel %vm202_vm3, %v2184_v48, 0.0 }
 0x2b6   :  { %2187 = vpow2.f32 %v438_v49  ;;  %449 = vadd.xlane.f32.xlu0 %v448_v51 }
 0x2b7   :  { %v2625_v52 = vpop.eup %2185  ;;  %2189 = vpow2.f32 %v434_v50 }
 0x2b8   :  { %v454_v53 = vsel %vm202_vm3, %v2625_v52, 0.0 }
 0x2b9   :  { %455 = vadd.xlane.f32.xlu2 %v454_v53  ;;  %v414_v54 = vpop.xlane.xlu2 %413 }
 0x2ba   :  { %v428_v55 = vsub.f32 %v396_v20, %v414_v54 }
 0x2bc   :  { %v2629_v56 = vpop.eup %2187  ;;  %v440_v57 = vmul.f32 1.442695, %v428_v55 }
 0x2bd   :  { %v2631_v59 = vpop.eup %2189  ;;  %v457_v60 = vsel %vm202_vm3, %v2629_v56, 0.0 }
 0x2be   :  { %2191 = vpow2.f32 %v440_v57  ;;  %458 = vadd.xlane.f32.xlu0 %v457_v60  ;;  %v451_v61 = vsel %vm202_vm3, %v2631_v59, 0.0 }
 0x2bf   :  { %452 = vadd.xlane.f32.xlu1 %v451_v61 }
 0x2c1   :  { %v423_v62 = vpop.xlane.xlu2 %422 }
 0x2c2   :  { %v431_v63 = vsub.f32 %v399_v28, %v423_v62 }
 0x2c4   :  { %v560_v0 = vpop.permute.xlu1 %559  ;;  %v2192_v1 = vpop.eup %2191  ;;  %v446_v2 = vmul.f32 1.442695, %v431_v63 }
 0x2c5   :  { %v565_v3 = vsel %vm129_vm0, %v560_v0, 0  ;;  %v539_v4 = vpop.permute.xlu0 %538  ;;  %v460_v6 = vsel %vm202_vm3, %v2192_v1, 0.0 }
 0x2c6   :  { %v544_v5 = vsel %vm129_vm0, %v539_v4, 0  ;;  %574 = vmatpush.bf16.msrb.mxu1 %v565_v3  ;;  %2193 = vpow2.f32 %v446_v2  ;;  %461 = vadd.xlane.f32.xlu0 %v460_v6 }
 0x2c7   :  { %553 = vmatpush.bf16.msrb.mxu0 %v544_v5 }
 0x2c9   :  { %v581_v7 = vpop.permute.xlu2 %580 }
 0x2ca   :  { %v586_v8 = vsel %vm129_vm0, %v581_v7, 0 }
 0x2cb   :  { %595 = vmatpush.bf16.msrb.mxu2 %v586_v8 }
 0x2cc   :  { %v2194_v9 = vpop.eup %2193 }
 0x2cd   :  { %v469_v10 = vsel %vm202_vm3, %v2194_v9, 0.0 }
 0x2ce   :  { %470 = vadd.xlane.f32.xlu0 %v469_v10 }
 0x2e2   :  { %622 = vrot.lane.b32.xlu0 %v2540_v21, %s2419_s18 }
 0x2ef   :  { %v420_v11 = vpop.xlane.xlu1 %419  ;;  %v417_v15 = vpop.xlane.xlu0 %416 }
 0x2f0   :  { %v430_v12 = vsub.f32 %v2615_v34, %v420_v11  ;;  %v429_v16 = vsub.f32 %v2618_v35, %v417_v15 }
 0x2f2   :  { %v444_v17 = vmul.f32 1.442695, %v430_v12  ;;  %v442_v18 = vmul.f32 1.442695, %v429_v16 }
 0x2f4   :  { %2195 = vpow2.f32 %v444_v17 }
 0x2f5   :  { %2197 = vpow2.f32 %v442_v18 }
 0x2fa   :  { %v2196_v19 = vpop.eup %2195 }
 0x2fb   :  { %v2198_v20 = vpop.eup %2197  ;;  %v466_v22 = vsel %vm202_vm3, %v2196_v19, 0.0 }
 0x2fc   :  { %467 = vadd.xlane.f32.xlu1 %v466_v22  ;;  %v463_v23 = vsel %vm202_vm3, %v2198_v20, 0.0 }
 0x2fd   :  { %464 = vadd.xlane.f32.xlu2 %v463_v23 }
 0x315   :  { %601 = vrot.lane.b32.xlu1 %v2548_v26, %s2418_s17  ;;  %643 = vrot.lane.b32.xlu2 %v2548_v26, %s2419_s18 }
 0x329   :  { %v450_v21 = vpop.xlane.xlu0 %449 }
 0x32a   :  { %2199 = vrcp.f32 %v450_v21 }
 0x32c   :  { %v456_v24 = vpop.xlane.xlu2 %455 }
 0x32d   :  { %2201 = vrcp.f32 %v456_v24 }
 0x330   :  { %v2200_v25 = vpop.eup %2199 }
 0x331   :  { %v480_v27 = vmul.f32 %v2200_v25, %v2184_v48  ;;  %v459_v28 = vpop.xlane.xlu0 %458 }
 0x332   :  { %v453_v30 = vpop.xlane.xlu1 %452  ;;  %2203 = vrcp.f32 %v459_v28 }
 0x333   :  { %v2202_v29 = vpop.eup %2201  ;;  %v488_v31 = vpack.c.bf16 %v480_v27, %v480_v27  ;;  %2205 = vrcp.f32 %v453_v30 }
 0x334   :  { %v482_v32 = vmul.f32 %v2202_v29, %v2625_v52 }
 0x335   :  { %1946 = vmatmul.msk.bf16.vlgmr.msra.gmra.mxu2 %vm202_vm3, %v488_v31 }
 0x336   :  { %v490_v33 = vpack.c.bf16 %v482_v32, %v482_v32 }
 0x338   :  { %1948 = vmatmul.msk.bf16.vlgmr.msrb.gmra.mxu0 %vm202_vm3, %v490_v33  ;;  %v2204_v26 = vpop.eup %2203 }
 0x339   :  { %v2206_v34 = vpop.eup %2205  ;;  %v483_v35 = vmul.f32 %v2204_v26, %v2629_v56  ;;  %v462_v36 = vpop.xlane.xlu0 %461 }
 0x33a   :  { %v481_v37 = vmul.f32 %v2206_v34, %v2631_v59  ;;  %2207 = vrcp.f32 %v462_v36 }
 0x33b   :  { %v491_v38 = vpack.c.bf16 %v483_v35, %v483_v35 }
 0x33c   :  { %v489_v39 = vpack.c.bf16 %v481_v37, %v481_v37  ;;  %v2685_v37 = vld [vmem:[%s2998_s6] sm:$0x3f] }
 0x33d   :  { %1949 = vmatmul.msk.bf16.vlgmr.msrb.gmra.mxu1 %vm202_vm3, %v491_v38  ;;  %v701_v38 = vperm.slane %v2685_v37, 0 }
 0x33e   :  { %1947 = vmatmul.msk.bf16.vlgmr.msra.gmra.mxu3 %vm202_vm3, %v489_v39 }
 0x340   :  { %v2208_v40 = vpop.eup %2207 }
 0x341   :  { %v484_v41 = vmul.f32 %v2208_v40, %v2192_v1  ;;  %v471_v43 = vpop.xlane.xlu0 %470 }
 0x342   :  { %2209 = vrcp.f32 %v471_v43 }
 0x343   :  { %v492_v42 = vpack.c.bf16 %v484_v41, %v484_v41 }
 0x345   :  { %1950 = vmatmul.msk.bf16.vlgmr.msrb.gmra.mxu2 %vm202_vm3, %v492_v42 }
 0x348   :  { %v2210_v48 = vpop.eup %2209 }
 0x349   :  { %v487_v50 = vmul.f32 %v2210_v48, %v2194_v9 }
 0x34b   :  { %v495_v55 = vpack.c.bf16 %v487_v50, %v487_v50 }
 0x354   :  { %v623_v44 = vpop.permute.xlu0 %622 }
 0x355   :  { %v628_v45 = vsel %vm129_vm0, %v623_v44, 0 }
 0x356   :  { %637 = vmatpush.bf16.msra.mxu0 %v628_v45 }
 0x36f   :  { %v468_v46 = vpop.xlane.xlu1 %467 }
 0x370   :  { %2211 = vrcp.f32 %v468_v46  ;;  %v465_v47 = vpop.xlane.xlu2 %464 }
 0x371   :  { %2213 = vrcp.f32 %v465_v47  ;;  %v2422_v47 = vmov 32.0  }
 0x372   :  { %2215 = vrcp.f32 %v2422_v47  ;;  %v843_v47 = vperm.slane %v2685_v37, 1 }
 0x376   :  { %v2212_v49 = vpop.eup %2211 }
 0x377   :  { %v486_v51 = vmul.f32 %v2212_v49, %v2196_v19  ;;  %v2214_v56 = vpop.eup %2213  ;;  %v2100_v19 = vld [vmem:[%s2997_s5 + $0x8] sm:$0xff] }
 0x378   :  { %v644_v52 = vpop.permute.xlu2 %643  ;;  %v485_v57 = vmul.f32 %v2214_v56, %v2198_v20  ;;  %723 = vmatpush.bf16.msra.mxu2 %v2100_v19  ;;  %v2099_v20 = vld [vmem:[%s2997_s5] sm:$0xff]  ;;  %v2216_v48 = vpop.eup %2215 }
 0x379   :  { %v494_v53 = vpack.c.bf16 %v486_v51, %v486_v51  ;;  %v649_v54 = vsel %vm129_vm0, %v644_v52, 0  ;;  %v740_v49 = vmul.f32 32.0, %v2216_v48  ;;  %vm744_vm6 = vweird.f32 %v2216_v48 }
 0x37a   :  { %658 = vmatpush.bf16.msra.mxu1 %v649_v54  ;;  %v493_v61 = vpack.c.bf16 %v485_v57, %v485_v57 }
 0x37b   :  { %1952 = vmatmul.msk.bf16.vlgmr.msra.gmra.mxu0 %vm202_vm3, %v494_v53  ;;  %v741_v50 = vsub.f32 1.0, %v740_v49 }
 0x37c   :  { %724 = vmatpush.bf16.msra.mxu2 %v2099_v20 }
 0x37d   :  { %1953 = vmatmul.msk.bf16.vlgmr.msra.gmra.mxu1 %vm202_vm3, %v495_v55  ;;  %v742_v51 = vmul.f32 %v2216_v48, %v741_v50 }
 0x37f   :  { %v743_v52 = vadd.f32 %v2216_v48, %v742_v51 }
 0x381   :  { %v2692_v53 = vsel %vm744_vm6, %v2216_v48, %v743_v52 }
 0x387   :  { %v602_v59 = vpop.permute.xlu1 %601 }
 0x388   :  { %v607_v60 = vsel %vm129_vm0, %v602_v59, 0 }
 0x389   :  { %616 = vmatpush.bf16.msrb.mxu3 %v607_v60 }
 0x38c   :  { %1951 = vmatmul.msk.bf16.vlgmr.msrb.gmra.mxu3 %vm202_vm3, %v493_v61 }
 0x3b5   :  { %v555_v62 = vpop.f32.mrf.mxu0 }
 0x3b8   :  { %v513_v63 = vpop.f32.mrf.mxu2 }
 0x3ba   :  { %v576_v0 = vpop.f32.mrf.mxu1 }
 0x3bb   :  { %v2148_v1 = vpack.i.bf16 %v576_v0, %v555_v62 }
 0x3bd   :  { %v557_v2 = vpop.f32.mrf.mxu0  ;;  %2149 = vrot.lane.b32.xlu0 %v2148_v1, %s2420_s4 }
 0x3c0   :  { %v515_v3 = vpop.f32.mrf.mxu2 }
 0x3c1   :  { %v534_v4 = vpop.f32.mrf.mxu3  ;;  %v2101_v3 = vld [vmem:[%s2999_s7] sm:$0xff] }
 0x3c2   :  { %v578_v5 = vpop.f32.mrf.mxu1 }
 0x3c8   :  { %v597_v6 = vpop.f32.mrf.mxu2 }
 0x3c9   :  { %v536_v7 = vpop.f32.mrf.mxu3 }
 0x3d0   :  { %v599_v8 = vpop.f32.mrf.mxu2 }
 0x3f8   :  { %v639_v9 = vpop.f32.mrf.mxu0 }
 0x3fa   :  { %v660_v10 = vpop.f32.mrf.mxu1 }
 0x3fb   :  { %v2158_v11 = vpack.i.bf16 %v660_v10, %v639_v9 }
 0x3fd   :  { %2159 = vrot.lane.b32.xlu2 %v2158_v11, %s3007_s8 }
 0x400   :  { %v641_v12 = vpop.f32.mrf.mxu0 }
 0x402   :  { %v662_v15 = vpop.f32.mrf.mxu1 }
 0x40f   :  { %v618_v16 = vpop.f32.mrf.mxu3 }
 0x410   :  { %v2153_v17 = vpack.i.bf16 %v618_v16, %v597_v6 }
 0x412   :  { %2154 = vrot.lane.b32.xlu1 %v2153_v17, %s3008_s15 }
 0x417   :  { %v620_v18 = vpop.f32.mrf.mxu3 }
 0x42f   :  { %v2150_v22 = vpop.permute.xlu0 %2149 }
 0x430   :  { %v2152_v23 = vunpack.i.h.bf16 %v2150_v22  ;;  %v2151_v21 = vunpack.i.l.bf16 %v2150_v22  ;;  %v784_v22 = vperm.slane %v2685_v37, 2 }
 0x432   :  { %v689_v29 = vsel %vm202_vm3, %v534_v4, %v2152_v23  ;;  %v688_v30 = vsel %vm202_vm3, %v513_v63, %v2151_v21  ;;  %v2102_v63 = vld [vmem:[%s2999_s7 + $0x8] sm:$0xff] }
 0x433   :  { %820 = vmatpush.bf16.msra.mxu3 %v2102_v63 }
 0x437   :  { %821 = vmatpush.bf16.msra.mxu3 %v2101_v3 }
 0x457   :  { %v2160_v24 = vpop.permute.xlu2 %2159 }
 0x458   :  { %v2162_v31 = vunpack.i.h.bf16 %v2160_v24  ;;  %v2161_v32 = vunpack.i.l.bf16 %v2160_v24 }
 0x484   :  { %v2155_v25 = vpop.permute.xlu1 %2154 }
 0x485   :  { %v2157_v27 = vunpack.i.h.bf16 %v2155_v25  ;;  %v2156_v28 = vunpack.i.l.bf16 %v2155_v25  ;;  %v787_v25 = vperm.slane %v2685_v37, 3 }
 0x487   :  { %v691_v33 = vsel %vm690_vm5, %v688_v30, %v2156_v28  ;;  %v692_v26 = vsel %vm690_vm5, %v689_v29, %v2157_v27 }
 0x488   :  { %v693_v34 = vsel %vm125_vm1, %v691_v33, %v2161_v32  ;;  %v694_v35 = vsel %vm125_vm1, %v692_v26, %v2162_v31  ;;  %v2106_v33 = vld [vmem:[%s3001_s9 + $0x18] sm:$0xff]  ;;  %v2105_v26 = vld [vmem:[%s3001_s9 + $0x10] sm:$0xff] }
 0x489   :  { %v696_v36 = vpack.c.bf16 %v694_v35, %v693_v34  ;;  %876 = vmatpush.bf16.msrb.mxu0 %v2106_v33  ;;  %v2104_v34 = vld [vmem:[%s3001_s9 + $0x8] sm:$0xff]  ;;  %v2103_v35 = vld [vmem:[%s3001_s9] sm:$0xff] }
 0x48b   :  { %1962 = vmatmul.msk.bf16.vlgmr.msra.gmra.mxu2 %vm177_vm2, %v696_v36 }
 0x48d   :  { %877 = vmatpush.bf16.msrb.mxu0 %v2105_v26 }
 0x491   :  { %878 = vmatpush.bf16.msrb.mxu0 %v2104_v34 }
 0x495   :  { %879 = vmatpush.bf16.msrb.mxu0 %v2103_v35  ;;  %v2180_v35 = vld [vmem:[#allocation7 + $0x1] ss:$0 sm:$0xff] }
 0x50e   :  { %v726_v39 = vpop.f32.mrf.mxu2 }
 0x50f   :  { %v727_v40 = vadd.f32 %v726_v39, %v701_v38 }
 0x511   :  { %v731_v41 = vadd.f32 %v727_v40, %v2533_v13 }
 0x513   :  { %v733_v42 = vsel %vm177_vm2, %v731_v41, 0.0 }
 0x514   :  { %734 = vadd.xlane.f32.xlu0 %v733_v42 }
 0x516   :  { %v728_v43 = vpop.f32.mrf.mxu2 }
 0x517   :  { %v729_v44 = vadd.f32 %v728_v43, %v701_v38  ;;  %v2179_v38 = vld [vmem:[#allocation8] ss:$0 sm:$0xff] }
 0x519   :  { %v732_v45 = vadd.f32 %v729_v44, %v2535_v14 }
 0x51b   :  { %v736_v46 = vsel %vm177_vm2, %v732_v45, 0.0 }
 0x51c   :  { %737 = vadd.xlane.f32.xlu1 %v736_v46 }
 0x587   :  { %v735_v13 = vpop.xlane.xlu0 %734 }
 0x588   :  { %v746_v54 = vmul.f32 %v2692_v53, %v735_v13 }
 0x58a   :  { %v748_v55 = vsub.f32 %v731_v41, %v746_v54 }
 0x58c   :  { %v750_v56 = vmul.f32 %v748_v55, %v748_v55 }
 0x58e   :  { %v752_v14 = vsel %vm177_vm2, %v750_v56, 0.0 }
 0x58f   :  { %v738_v57 = vpop.xlane.xlu1 %737  ;;  %753 = vadd.xlane.f32.xlu2 %v752_v14 }
 0x590   :  { %v747_v59 = vmul.f32 %v2692_v53, %v738_v57 }
 0x592   :  { %v749_v60 = vsub.f32 %v732_v45, %v747_v59 }
 0x594   :  { %v751_v61 = vmul.f32 %v749_v60, %v749_v60 }
 0x596   :  { %v755_v62 = vsel %vm177_vm2, %v751_v61, 0.0 }
 0x597   :  { %756 = vadd.xlane.f32.xlu0 %v755_v62 }
 0x602   :  { %v754_v0 = vpop.xlane.xlu2 %753 }
 0x603   :  { %v758_v1 = vmul.f32 %v754_v0, %v2692_v53 }
 0x605   :  { %v760_v2 = vadd.f32 1e-05, %v758_v1 }
 0x607   :  { %2217 = vrsqrt.f32 %v760_v2  ;;  %vm768_vm8 = vweird.f32 %v760_v2 }
 0x60a   :  { %v757_v4 = vpop.xlane.xlu0 %756 }
 0x60b   :  { %v759_v5 = vmul.f32 %v757_v4, %v2692_v53 }
 0x60d   :  { %v2218_v6 = vpop.eup %2217  ;;  %v761_v7 = vadd.f32 1e-05, %v759_v5 }
 0x60e   :  { %v763_v8 = vmul.f32 %v2218_v6, %v760_v2  ;;  %vm769_vm7 = vweird.f32 %v2218_v6  ;;  %v2108_v2 = vld [vmem:[%s2995_s3 + $0x18] sm:$0xff] }
 0x60f   :  { %2219 = vrsqrt.f32 %v761_v7  ;;  %vm770_vm9 = vmor %vm768_vm8, %vm769_vm7  ;;  %vm778_vm11 = vweird.f32 %v761_v7  ;;  %970 = vmatpush.bf16.msrb.mxu1 %v2108_v2 }
 0x610   :  { %v764_v9 = vmul.f32 %v2218_v6, %v763_v8 }
 0x612   :  { %v765_v10 = vmul.f32 0.5, %v764_v9 }
 0x614   :  { %v766_v11 = vsub.f32 1.5, %v765_v10 }
 0x615   :  { %v2220_v12 = vpop.eup %2219 }
 0x616   :  { %v767_v15 = vmul.f32 %v2218_v6, %v766_v11  ;;  %v773_v16 = vmul.f32 %v2220_v12, %v761_v7  ;;  %vm779_vm10 = vweird.f32 %v2220_v12 }
 0x617   :  { %vm780_vm12 = vmor %vm778_vm11, %vm779_vm10 }
 0x618   :  { %v774_v17 = vmul.f32 %v2220_v12, %v773_v16  ;;  %v771_v18 = vsel %vm770_vm9, %v2218_v6, %v767_v15  ;;  %v2107_v6 = vld [vmem:[%s2995_s3 + $0x10] sm:$0xff]  ;;  %s3010_s3 = smov 16  }
 0x619   :  { %v782_v23 = vmul.f32 %v771_v18, %v748_v55  ;;  %971 = vmatpush.bf16.msrb.mxu1 %v2107_v6 }
 0x61a   :  { %v775_v19 = vmul.f32 0.5, %v774_v17 }
 0x61b   :  { %v785_v27 = vmul.f32 %v784_v22, %v782_v23 }
 0x61c   :  { %v776_v20 = vsub.f32 1.5, %v775_v19 }
 0x61d   :  { %v788_v30 = vadd.f32 %v787_v25, %v785_v27 }
 0x61e   :  { %v777_v21 = vmul.f32 %v2220_v12, %v776_v20 }
 0x620   :  { %v781_v24 = vsel %vm780_vm12, %v2220_v12, %v777_v21 }
 0x621   :  { %v783_v28 = vmul.f32 %v781_v24, %v749_v60  ;;  %v932_v24 = vperm.slane %v2685_v37, 4 }
 0x623   :  { %v786_v29 = vmul.f32 %v784_v22, %v783_v28 }
 0x625   :  { %v789_v31 = vadd.f32 %v787_v25, %v786_v29  ;;  %v935_v29 = vperm.slane %v2685_v37, 5 }
 0x627   :  { %v790_v32 = vpack.c.bf16 %v789_v31, %v788_v30 }
 0x629   :  { %1971 = vmatmul.msk.bf16.vlgmr.msra.gmra.mxu3 %vm177_vm2, %v790_v32 }
 0x6ac   :  { %v823_v36 = vpop.f32.mrf.mxu3 }
 0x6ad   :  { %v824_v39 = vadd.f32 %v2179_v38, %v823_v36 }
 0x6af   :  { %v830_v41 = vmul.f32 0.2, %v824_v39  ;;  %vm828_vm13 = vcmp.gt.f32.partialorder %v824_v39, 0.0 }
 0x6b1   :  { %v832_v44 = vsel %vm828_vm13, %v824_v39, %v830_v41 }
 0x6b4   :  { %v825_v40 = vpop.f32.mrf.mxu3 }
 0x6b5   :  { %v826_v42 = vadd.f32 %v2179_v38, %v825_v40 }
 0x6b7   :  { %vm829_vm14 = vcmp.gt.f32.partialorder %v826_v42, 0.0  ;;  %v831_v43 = vmul.f32 0.2, %v826_v42 }
 0x6b9   :  { %v833_v45 = vsel %vm829_vm14, %v826_v42, %v831_v43 }
 0x6ba   :  { %v834_v46 = vpack.c.bf16 %v833_v45, %v832_v44 }
 0x6bc   :  { %1988 = vmatmul.msk.bf16.vlgmr.msrb.gmra.mxu0 %vm868_vm15, %v834_v46 }
 0x739   :  { %v881_v48 = vpop.f32.mrf.mxu0 }
 0x73a   :  { %v882_v49 = vadd.f32 %v881_v48, %v843_v47 }
 0x73c   :  { %v886_v50 = vadd.f32 %v882_v49, %v788_v30 }
 0x73e   :  { %v888_v51 = vsel %vm177_vm2, %v886_v50, 0.0 }
 0x73f   :  { %889 = vadd.xlane.f32.xlu1 %v888_v51 }
 0x741   :  { %v883_v52 = vpop.f32.mrf.mxu0 }
 0x742   :  { %v884_v13 = vadd.f32 %v883_v52, %v843_v47 }
 0x744   :  { %v887_v54 = vadd.f32 %v884_v13, %v789_v31 }
 0x746   :  { %v891_v55 = vsel %vm177_vm2, %v887_v54, 0.0 }
 0x747   :  { %892 = vadd.xlane.f32.xlu2 %v891_v55 }
 0x7b2   :  { %v890_v56 = vpop.xlane.xlu1 %889 }
 0x7b3   :  { %v894_v14 = vmul.f32 %v890_v56, %v2692_v53 }
 0x7b5   :  { %v896_v57 = vsub.f32 %v886_v50, %v894_v14 }
 0x7b7   :  { %v898_v59 = vmul.f32 %v896_v57, %v896_v57 }
 0x7b9   :  { %v900_v60 = vsel %vm177_vm2, %v898_v59, 0.0 }
 0x7ba   :  { %v893_v61 = vpop.xlane.xlu2 %892  ;;  %901 = vadd.xlane.f32.xlu0 %v900_v60 }
 0x7bb   :  { %v895_v62 = vmul.f32 %v893_v61, %v2692_v53 }
 0x7bd   :  { %v897_v63 = vsub.f32 %v887_v54, %v895_v62 }
 0x7bf   :  { %v899_v0 = vmul.f32 %v897_v63, %v897_v63 }
 0x7c1   :  { %v903_v1 = vsel %vm177_vm2, %v899_v0, 0.0 }
 0x7c2   :  { %904 = vadd.xlane.f32.xlu1 %v903_v1 }
 0x82d   :  { %v902_v3 = vpop.xlane.xlu0 %901 }
 0x82e   :  { %v906_v4 = vmul.f32 %v902_v3, %v2692_v53 }
 0x830   :  { %v908_v5 = vadd.f32 1e-05, %v906_v4 }
 0x832   :  { %2221 = vrsqrt.f32 %v908_v5  ;;  %vm916_vm6 = vweird.f32 %v908_v5 }
 0x835   :  { %v905_v7 = vpop.xlane.xlu1 %904 }
 0x836   :  { %v907_v8 = vmul.f32 %v905_v7, %v2692_v53 }
 0x838   :  { %v2222_v9 = vpop.eup %2221  ;;  %v909_v10 = vadd.f32 1e-05, %v907_v8 }
 0x839   :  { %v911_v11 = vmul.f32 %v2222_v9, %v908_v5  ;;  %vm917_vm4 = vweird.f32 %v2222_v9 }
 0x83a   :  { %2223 = vrsqrt.f32 %v909_v10  ;;  %vm918_vm7 = vmor %vm916_vm6, %vm917_vm4  ;;  %vm926_vm9 = vweird.f32 %v909_v10 }
 0x83b   :  { %v912_v12 = vmul.f32 %v2222_v9, %v911_v11 }
 0x83d   :  { %v913_v15 = vmul.f32 0.5, %v912_v12 }
 0x83f   :  { %v914_v16 = vsub.f32 1.5, %v913_v15 }
 0x840   :  { %v2224_v17 = vpop.eup %2223 }
 0x841   :  { %v915_v18 = vmul.f32 %v2222_v9, %v914_v16  ;;  %v921_v19 = vmul.f32 %v2224_v17, %v909_v10  ;;  %vm927_vm8 = vweird.f32 %v2224_v17 }
 0x842   :  { %vm928_vm10 = vmor %vm926_vm9, %vm927_vm8 }
 0x843   :  { %v922_v20 = vmul.f32 %v2224_v17, %v921_v19  ;;  %v919_v22 = vsel %vm918_vm7, %v2222_v9, %v915_v18 }
 0x844   :  { %v930_v25 = vmul.f32 %v919_v22, %v896_v57 }
 0x845   :  { %v923_v23 = vmul.f32 0.5, %v922_v20 }
 0x846   :  { %v933_v30 = vmul.f32 %v932_v24, %v930_v25 }
 0x847   :  { %v924_v21 = vsub.f32 1.5, %v923_v23 }
 0x848   :  { %v2739_v33 = vadd.f32 %v935_v29, %v933_v30 }
 0x849   :  { %v925_v27 = vmul.f32 %v2224_v17, %v924_v21 }
 0x84b   :  { %v929_v28 = vsel %vm928_vm10, %v2224_v17, %v925_v27 }
 0x84c   :  { %v931_v31 = vmul.f32 %v929_v28, %v897_v63 }
 0x84e   :  { %v934_v32 = vmul.f32 %v932_v24, %v931_v31 }
 0x850   :  { %v2741_v26 = vadd.f32 %v935_v29, %v934_v32 }
 0x852   :  { %v938_v34 = vpack.c.bf16 %v2741_v26, %v2739_v33 }
 0x854   :  { %2001 = vmatmul.msk.bf16.vlgmr.msrb.gmra.mxu1 %vm177_vm2, %v938_v34 }
 0x8d1   :  { %v973_v36 = vpop.f32.mrf.mxu1 }
 0x8d2   :  { %v974_v38 = vadd.f32 %v2180_v35, %v973_v36 }
 0x8d4   :  { %v978_v39 = vpack.c.bf16 %v974_v38, %v974_v38 }
 0x8d6   :  { %v981_v40 = vunpack.c.l.b16 %v978_v39 }
 0x8d8   :  { %v2746_v41 = vpack.c.b16 %v981_v40, %v981_v40 }
 0x8d9   :  { %v975_v37 = vpop.f32.mrf.mxu1 }
 0x8da   :  { %v976_v42 = vadd.f32 %v2180_v35, %v975_v37  ;;  %1030 = vrot.lane.b32.xlu1 %v2746_v41, %s2410_s26  ;;  %983 = vrot.lane.b32.xlu2 %v2746_v41, %s2411_s27 }
 0x8dc   :  { %v979_v43 = vpack.c.bf16 %v976_v42, %v976_v42 }
 0x8de   :  { %v1005_v44 = vunpack.c.l.b16 %v979_v43 }
 0x8e0   :  { %v2752_v45 = vpack.c.b16 %v1005_v44, %v1005_v44 }
 0x8e2   :  { %1007 = vrot.lane.b32.xlu0 %v2752_v45, %s2411_s27  ;;  %1099 = vrot.lane.b32.xlu1 %v2752_v45, %s2409_s25 }
 0x8e3   :  { %1076 = vrot.lane.b32.xlu2 %v2746_v41, %s2409_s25 }
 0x8ea   :  { %1053 = vrot.lane.b32.xlu0 %v2752_v45, %s2410_s26  ;;  %1074 = vrot.lane.b32.xlu1 %v2746_v41, %s2412_s28 }
 0x8eb   :  { %1051 = vrot.lane.b32.xlu2 %v2752_v45, %s2413_s29 }
 0x8f2   :  { %1028 = vrot.lane.b32.xlu0 %v2746_v41, %s2413_s29  ;;  %1145 = vrot.lane.b32.xlu1 %v2752_v45, %s2414_s1 }
 0x8f3   :  { %1122 = vrot.lane.b32.xlu2 %v2746_v41, %s2414_s1 }
 0x8fa   :  { %1097 = vrot.lane.b32.xlu0 %v2752_v45, %s2412_s28 }
 0x8fb   :  { %1143 = vrot.lane.b32.xlu2 %v2752_v45, %s2415_s30 }
 0x902   :  { %1120 = vrot.lane.b32.xlu0 %v2746_v41, %s2415_s30 }
 0x90a   :  { %1299 = vrot.lane.b32.xlu0 %v2752_v45, %s2403_s23 }
 0x934   :  { %v984_v46 = vpop.permute.xlu2 %983 }
 0x935   :  { %v989_v47 = vsel %vm202_vm3, %v984_v46, 0 }
 0x936   :  { %998 = vmatpush.bf16.xpose.msrb.mxu2 %v989_v47 }
 0x93d   :  { %v1077_v48 = vpop.permute.xlu2 %1076  ;;  %2002 = vmatmul.msk.bf16.vlgmr.msrb.gmra.mxu2 %vm202_vm3, %v978_v39 }
 0x93e   :  { %v1082_v49 = vsel %vm202_vm3, %v1077_v48, 0 }
 0x93f   :  { %1091 = vmatpush.bf16.xpose.msra.mxu2 %v1082_v49 }
 0x945   :  { %v1052_v50 = vpop.permute.xlu2 %1051 }
 0x94c   :  { %v1031_v51 = vpop.permute.xlu1 %1030 }
 0x94d   :  { %v1036_v52 = vsel %vm202_vm3, %v1031_v51, 0  ;;  %v1123_v13 = vpop.permute.xlu2 %1122 }
 0x94e   :  { %v1128_v54 = vsel %vm202_vm3, %v1123_v13, 0  ;;  %1045 = vmatpush.bf16.xpose.msra.mxu0 %v1036_v52 }
 0x954   :  { %v1008_v55 = vpop.permute.xlu0 %1007  ;;  %v1100_v56 = vpop.permute.xlu1 %1099 }
 0x955   :  { %v1013_v14 = vsel %vm202_vm3, %v1008_v55, 0  ;;  %v1105_v57 = vsel %vm202_vm3, %v1100_v56, 0  ;;  %v1144_v2 = vpop.permute.xlu2 %1143 }
 0x956   :  { %1137 = vmatpush.bf16.xpose.msrb.mxu0 %v1128_v54  ;;  %1022 = vmatpush.bf16.xpose.msrb.mxu3 %v1013_v14 }
 0x95c   :  { %v1054_v59 = vpop.permute.xlu0 %1053  ;;  %v1075_v60 = vpop.permute.xlu1 %1074 }
 0x95d   :  { %v1059_v61 = vsel %vm202_vm3, %v1054_v59, 0  ;;  %2003 = vmatmul.msk.bf16.vlgmr.msrb.gmra.mxu3 %vm202_vm3, %v979_v43  ;;  %2006 = vmatmul.msk.bf16.vlgmr.msra.gmra.mxu2 %vm202_vm3, %v1075_v60 }
 0x95e   :  { %1114 = vmatpush.bf16.xpose.msra.mxu3 %v1105_v57  ;;  %1068 = vmatpush.bf16.xpose.msra.mxu1 %v1059_v61 }
 0x964   :  { %v1029_v62 = vpop.permute.xlu0 %1028  ;;  %v1146_v63 = vpop.permute.xlu1 %1145 }
 0x965   :  { %v1151_v0 = vsel %vm202_vm3, %v1146_v63, 0  ;;  %2004 = vmatmul.msk.bf16.vlgmr.msra.gmra.mxu0 %vm202_vm3, %v1029_v62  ;;  %2005 = vmatmul.msk.bf16.vlgmr.msra.gmra.mxu1 %vm202_vm3, %v1052_v50 }
 0x966   :  { %1160 = vmatpush.bf16.xpose.msrb.mxu1 %v1151_v0 }
 0x96c   :  { %v1098_v1 = vpop.permute.xlu0 %1097 }
 0x96d   :  { %2007 = vmatmul.msk.bf16.vlgmr.msra.gmra.mxu3 %vm202_vm3, %v1098_v1 }
 0x974   :  { %v1121_v3 = vpop.permute.xlu0 %1120 }
 0x975   :  { %2008 = vmatmul.msk.bf16.vlgmr.msrb.gmra.mxu0 %vm202_vm3, %v1121_v3  ;;  %2009 = vmatmul.msk.bf16.vlgmr.msrb.gmra.mxu1 %vm202_vm3, %v1144_v2 }
 0x97c   :  { %v1300_v4 = vpop.permute.xlu0 %1299 }
 0x97d   :  { %v1305_v5 = vsel %vm129_vm0, %v1300_v4, 0 }
 0x97e   :  { %1314 = vmatpush.bf16.msrb.mxu3 %v1305_v5 }
 0x9c0   :  { %v1000_v6 = vpop.f32.mrf.mxu2 }
 0x9c1   :  { %v1166_v7 = vmul.f32 0.35355338, %v1000_v6 }
 0x9c3   :  { %v1174_v8 = vadd.f32 %v1166_v7, %v2594_v58 }
 0x9c5   :  { %v1182_v9 = vsel %vm202_vm3, %v1174_v8, -inf }
 0x9c6   :  { %1183 = vmax.xlane.f32.xlu1 %v1182_v9 }
 0x9c8   :  { %v1002_v10 = vpop.f32.mrf.mxu2 }
 0x9e0   :  { %v1024_v11 = vpop.f32.mrf.mxu3  ;;  %v1093_v12 = vpop.f32.mrf.mxu2 }
 0x9e1   :  { %v1167_v15 = vmul.f32 0.35355338, %v1024_v11  ;;  %v1170_v39 = vmul.f32 0.35355338, %v1093_v12 }
 0x9e2   :  { %v1047_v16 = vpop.f32.mrf.mxu0  ;;  %v1070_v17 = vpop.f32.mrf.mxu1 }
 0x9e3   :  { %v1168_v18 = vmul.f32 0.35355338, %v1047_v16  ;;  %v1169_v19 = vmul.f32 0.35355338, %v1070_v17  ;;  %v1175_v20 = vadd.f32 %v1167_v15, %v2594_v58  ;;  %v1178_v40 = vadd.f32 %v1170_v39, %v2594_v58 }
 0x9e5   :  { %v1185_v22 = vsel %vm202_vm3, %v1175_v20, -inf  ;;  %v1176_v23 = vadd.f32 %v1168_v18, %v2594_v58  ;;  %v1177_v21 = vadd.f32 %v1169_v19, %v2594_v58  ;;  %v1194_v44 = vsel %vm202_vm3, %v1178_v40, -inf }
 0x9e6   :  { %1186 = vmax.xlane.f32.xlu0 %v1185_v22 }
 0x9e7   :  { %v1188_v24 = vsel %vm202_vm3, %v1176_v23, -inf  ;;  %v1191_v25 = vsel %vm202_vm3, %v1177_v21, -inf }
 0x9e8   :  { %v1026_v27 = vpop.f32.mrf.mxu3  ;;  %1189 = vmax.xlane.f32.xlu2 %v1188_v24  ;;  %v1095_v28 = vpop.f32.mrf.mxu2  ;;  %1192 = vmax.xlane.f32.xlu1 %v1191_v25 }
 0x9ea   :  { %v1049_v29 = vpop.f32.mrf.mxu0  ;;  %v1072_v30 = vpop.f32.mrf.mxu1 }
 0x9f0   :  { %v1116_v31 = vpop.f32.mrf.mxu3 }
 0x9f1   :  { %v1171_v37 = vmul.f32 0.35355338, %v1116_v31 }
 0x9f2   :  { %v1139_v32 = vpop.f32.mrf.mxu0  ;;  %v1162_v34 = vpop.f32.mrf.mxu1 }
 0x9f3   :  { %v1172_v42 = vmul.f32 0.35355338, %v1139_v32  ;;  %v1173_v43 = vmul.f32 0.35355338, %v1162_v34  ;;  %v2814_v46 = vadd.f32 %v1171_v37, %v2594_v58 }
 0x9f5   :  { %v1180_v47 = vadd.f32 %v1172_v42, %v2594_v58  ;;  %v1181_v48 = vadd.f32 %v1173_v43, %v2594_v58  ;;  %v1197_v49 = vsel %vm202_vm3, %v2814_v46, -inf }
 0x9f7   :  { %v1200_v50 = vsel %vm202_vm3, %v1180_v47, -inf  ;;  %v1203_v51 = vsel %vm202_vm3, %v1181_v48, -inf }
 0x9f8   :  { %v1118_v35 = vpop.f32.mrf.mxu3 }
 0x9fa   :  { %1341 = vrot.lane.b32.xlu0 %v2752_v45, %s2417_s16  ;;  %v1141_v36 = vpop.f32.mrf.mxu0  ;;  %v1164_v38 = vpop.f32.mrf.mxu1 }
 0xa00   :  { %1320 = vrot.lane.b32.xlu2 %v2746_v41, %s2417_s16 }
 0xa01   :  { %1278 = vrot.lane.b32.xlu1 %v2746_v41, %s2403_s23  ;;  %s3011_s23 = smov 24  }
 0xa24   :  { %1195 = vmax.xlane.f32.xlu0 %v1194_v44 }
 0xa29   :  { %1198 = vmax.xlane.f32.xlu2 %v1197_v49 }
 0xa2b   :  { %1201 = vmax.xlane.f32.xlu1 %v1200_v50 }
 0xa2c   :  { %1204 = vmax.xlane.f32.xlu0 %v1203_v51 }
 0xa39   :  { %v1184_v52 = vpop.xlane.xlu1 %1183 }
 0xa3a   :  { %v1206_v13 = vsub.f32 %v1174_v8, %v1184_v52 }
 0xa3c   :  { %v1214_v54 = vmul.f32 1.442695, %v1206_v13 }
 0xa3e   :  { %2225 = vpow2.f32 %v1214_v54 }
 0xa44   :  { %v2822_v55 = vpop.eup %2225 }
 0xa45   :  { %v1230_v56 = vsel %vm202_vm3, %v2822_v55, 0.0 }
 0xa46   :  { %1231 = vadd.xlane.f32.xlu2 %v1230_v56 }
 0xa59   :  { %v1187_v58 = vpop.xlane.xlu0 %1186 }
 0xa5a   :  { %v1207_v14 = vsub.f32 %v1175_v20, %v1187_v58 }
 0xa5b   :  { %v1193_v57 = vpop.xlane.xlu1 %1192  ;;  %v1190_v59 = vpop.xlane.xlu2 %1189 }
 0xa5c   :  { %v1216_v60 = vmul.f32 1.442695, %v1207_v14  ;;  %v1209_v61 = vsub.f32 %v1177_v21, %v1193_v57  ;;  %v1208_v62 = vsub.f32 %v1176_v23, %v1190_v59 }
 0xa5e   :  { %2227 = vpow2.f32 %v1216_v60  ;;  %v1220_v63 = vmul.f32 1.442695, %v1209_v61  ;;  %v1218_v0 = vmul.f32 1.442695, %v1208_v62 }
 0xa60   :  { %2229 = vpow2.f32 %v1220_v63 }
 0xa61   :  { %2231 = vpow2.f32 %v1218_v0 }
 0xa63   :  { %v1321_v1 = vpop.permute.xlu2 %1320 }
 0xa64   :  { %v2228_v2 = vpop.eup %2227  ;;  %v1326_v3 = vsel %vm129_vm0, %v1321_v1, 0 }
 0xa65   :  { %1335 = vmatpush.bf16.msra.mxu0 %v1326_v3  ;;  %v1233_v4 = vsel %vm202_vm3, %v2228_v2, 0.0 }
 0xa66   :  { %v2230_v5 = vpop.eup %2229  ;;  %1234 = vadd.xlane.f32.xlu1 %v1233_v4 }
 0xa67   :  { %v2232_v6 = vpop.eup %2231  ;;  %v1239_v7 = vsel %vm202_vm3, %v2230_v5, 0.0 }
 0xa68   :  { %1240 = vadd.xlane.f32.xlu2 %v1239_v7  ;;  %v1236_v8 = vsel %vm202_vm3, %v2232_v6, 0.0 }
 0xa69   :  { %1237 = vadd.xlane.f32.xlu0 %v1236_v8 }
 0xa6c   :  { %v1342_v9 = vpop.permute.xlu0 %1341 }
 0xa6d   :  { %v1347_v10 = vsel %vm129_vm0, %v1342_v9, 0 }
 0xa6e   :  { %1356 = vmatpush.bf16.msra.mxu1 %v1347_v10 }
 0xa73   :  { %v1279_v11 = vpop.permute.xlu1 %1278 }
 0xa74   :  { %v1284_v12 = vsel %vm129_vm0, %v1279_v11, 0 }
 0xa75   :  { %1293 = vmatpush.bf16.msrb.mxu2 %v1284_v12 }
 0xa97   :  { %v1196_v15 = vpop.xlane.xlu0 %1195 }
 0xa98   :  { %v1210_v16 = vsub.f32 %v1178_v40, %v1196_v15 }
 0xa9a   :  { %v1222_v17 = vmul.f32 1.442695, %v1210_v16 }
 0xa9c   :  { %2233 = vpow2.f32 %v1222_v17  ;;  %v1199_v19 = vpop.xlane.xlu2 %1198 }
 0xa9d   :  { %v1211_v25 = vsub.f32 %v2814_v46, %v1199_v19 }
 0xa9e   :  { %v1202_v18 = vpop.xlane.xlu1 %1201 }
 0xa9f   :  { %v1212_v20 = vsub.f32 %v1180_v47, %v1202_v18  ;;  %v1205_v22 = vpop.xlane.xlu0 %1204  ;;  %v1224_v29 = vmul.f32 1.442695, %v1211_v25 }
 0xaa0   :  { %v1213_v23 = vsub.f32 %v1181_v48, %v1205_v22 }
 0xaa1   :  { %v1226_v21 = vmul.f32 1.442695, %v1212_v20 }
 0xaa2   :  { %v2234_v24 = vpop.eup %2233  ;;  %v1228_v27 = vmul.f32 1.442695, %v1213_v23 }
 0xaa3   :  { %2235 = vpow2.f32 %v1226_v21  ;;  %v1242_v28 = vsel %vm202_vm3, %v2234_v24, 0.0 }
 0xaa4   :  { %2237 = vpow2.f32 %v1228_v27  ;;  %1243 = vadd.xlane.f32.xlu1 %v1242_v28 }
 0xaa5   :  { %2239 = vpow2.f32 %v1224_v29 }
 0xaa9   :  { %v2236_v30 = vpop.eup %2235 }
 0xaaa   :  { %v2834_v31 = vpop.eup %2237  ;;  %v1248_v32 = vsel %vm202_vm3, %v2236_v30, 0.0 }
 0xaab   :  { %1249 = vadd.xlane.f32.xlu0 %v1248_v32  ;;  %v1251_v34 = vsel %vm202_vm3, %v2834_v31, 0.0  ;;  %v2240_v35 = vpop.eup %2239 }
 0xaac   :  { %1252 = vadd.xlane.f32.xlu2 %v1251_v34  ;;  %v1245_v36 = vsel %vm202_vm3, %v2240_v35, 0.0 }
 0xab4   :  { %1246 = vadd.xlane.f32.xlu2 %v1245_v36  ;;  %v2109_v36 = vld [vmem:[%s2997_s5 + $0x10] sm:$0xff] }
 0xab9   :  { %v1232_v38 = vpop.xlane.xlu2 %1231 }
 0xaba   :  { %2241 = vrcp.f32 %v1232_v38 }
 0xabd   :  { %1362 = vrot.lane.b32.xlu1 %v2746_v41, %s2418_s17 }
 0xabf   :  { %1383 = vrot.lane.b32.xlu0 %v2752_v45, %s2418_s17 }
 0xac0   :  { %v2242_v39 = vpop.eup %2241 }
 0xac1   :  { %v1262_v40 = vmul.f32 %v2242_v39, %v2822_v55 }
 0xac3   :  { %v1270_v37 = vpack.c.bf16 %v1262_v40, %v1262_v40 }
 0xac5   :  { %2010 = vmatmul.msk.bf16.vlgmr.msrb.gmra.mxu2 %vm202_vm3, %v1270_v37 }
 0xac7   :  { %1425 = vrot.lane.b32.xlu0 %v2752_v45, %s2419_s18 }
 0xacc   :  { %1404 = vrot.lane.b32.xlu2 %v2746_v41, %s2419_s18  ;;  %s2424_s18 = smov [#allocation10]  }
 0xacd   :  { %s1907_s19 = sshll.u32 %s2424_s18, 4  ;;  %s1908_s19 = int_to_ptr.vmem [resolvable:$true] %s1907_s19 }
 0xad9   :  { %v1235_v42 = vpop.xlane.xlu1 %1234 }
 0xada   :  { %2243 = vrcp.f32 %v1235_v42 }
 0xadb   :  { %v1241_v43 = vpop.xlane.xlu2 %1240 }
 0xadc   :  { %v1238_v44 = vpop.xlane.xlu0 %1237  ;;  %2245 = vrcp.f32 %v1241_v43 }
 0xadd   :  { %2247 = vrcp.f32 %v1238_v44 }
 0xae0   :  { %v2244_v46 = vpop.eup %2243 }
 0xae1   :  { %v1263_v47 = vmul.f32 %v2244_v46, %v2228_v2 }
 0xae2   :  { %v2246_v48 = vpop.eup %2245 }
 0xae3   :  { %v2248_v49 = vpop.eup %2247  ;;  %v1271_v50 = vpack.c.bf16 %v1263_v47, %v1263_v47  ;;  %v1265_v51 = vmul.f32 %v2246_v48, %v2230_v5 }
 0xae4   :  { %v1264_v52 = vmul.f32 %v2248_v49, %v2232_v6 }
 0xae5   :  { %v1273_v13 = vpack.c.bf16 %v1265_v51, %v1265_v51  ;;  %2011 = vmatmul.msk.bf16.vlgmr.msrb.gmra.mxu3 %vm202_vm3, %v1271_v50 }
 0xae6   :  { %v1272_v45 = vpack.c.bf16 %v1264_v52, %v1264_v52 }
 0xae7   :  { %2013 = vmatmul.msk.bf16.vlgmr.msra.gmra.mxu1 %vm202_vm3, %v1273_v13 }
 0xae8   :  { %2012 = vmatmul.msk.bf16.vlgmr.msra.gmra.mxu0 %vm202_vm3, %v1272_v45 }
 0xb17   :  { %v1244_v54 = vpop.xlane.xlu1 %1243 }
 0xb18   :  { %2249 = vrcp.f32 %v1244_v54 }
 0xb1e   :  { %v1250_v55 = vpop.xlane.xlu0 %1249  ;;  %v2250_v58 = vpop.eup %2249 }
 0xb1f   :  { %v1253_v41 = vpop.xlane.xlu2 %1252  ;;  %2251 = vrcp.f32 %v1250_v55  ;;  %v1266_v59 = vmul.f32 %v2250_v58, %v2234_v24 }
 0xb21   :  { %v1274_v3 = vpack.c.bf16 %v1266_v59, %v1266_v59 }
 0xb25   :  { %v2252_v14 = vpop.eup %2251 }
 0xb26   :  { %v1268_v60 = vmul.f32 %v2252_v14, %v2236_v30 }
 0xb27   :  { %v1247_v56 = vpop.xlane.xlu2 %1246 }
 0xb28   :  { %2253 = vrcp.f32 %v1247_v56  ;;  %v1276_v4 = vpack.c.bf16 %v1268_v60, %v1268_v60 }
 0xb29   :  { %2255 = vrcp.f32 %v1253_v41  ;;  %v2881_v41 = vld [vmem:[%s2998_s6 + $0x8] sm:$0x3f] }
 0xb2a   :  { %v1484_v54 = vperm.slane %v2881_v41, 0 }
 0xb2e   :  { %v2254_v57 = vpop.eup %2253 }
 0xb2f   :  { %v1363_v61 = vpop.permute.xlu1 %1362  ;;  %v1405_v62 = vpop.permute.xlu2 %1404  ;;  %v1267_v63 = vmul.f32 %v2254_v57, %v2240_v35  ;;  %v2110_v35 = vld [vmem:[%s2997_s5 + $0x18] sm:$0xff] }
 0xb30   :  { %v1368_v0 = vsel %vm129_vm0, %v1363_v61, 0  ;;  %v1410_v1 = vsel %vm129_vm0, %v1405_v62, 0  ;;  %v2256_v7 = vpop.eup %2255 }
 0xb31   :  { %1377 = vmatpush.bf16.msra.mxu2 %v1368_v0  ;;  %v1384_v2 = vpop.permute.xlu0 %1383  ;;  %1419 = vmatpush.bf16.msrb.mxu0 %v1410_v1  ;;  %v1275_v6 = vpack.c.bf16 %v1267_v63, %v1267_v63  ;;  %v1269_v8 = vmul.f32 %v2256_v7, %v2834_v31 }
 0xb32   :  { %v1389_v5 = vsel %vm129_vm0, %v1384_v2, 0 }
 0xb33   :  { %1398 = vmatpush.bf16.msra.mxu3 %v1389_v5  ;;  %v1277_v11 = vpack.c.bf16 %v1269_v8, %v1269_v8 }
 0xb34   :  { %2014 = vmatmul.msk.bf16.vlgmr.msra.gmra.mxu2 %vm202_vm3, %v1274_v3  ;;  %2016 = vmatmul.msk.bf16.vlgmr.msrb.gmra.mxu0 %vm202_vm3, %v1276_v4 }
 0xb35   :  { %1506 = vmatpush.bf16.msrb.mxu2 %v2110_v35 }
 0xb36   :  { %2015 = vmatmul.msk.bf16.vlgmr.msra.gmra.mxu3 %vm202_vm3, %v1275_v6 }
 0xb39   :  { %v1426_v9 = vpop.permute.xlu0 %1425  ;;  %1507 = vmatpush.bf16.msrb.mxu2 %v2109_v36 }
 0xb3a   :  { %v1431_v10 = vsel %vm129_vm0, %v1426_v9, 0 }
 0xb3b   :  { %1440 = vmatpush.bf16.msrb.mxu1 %v1431_v10  ;;  %v2111_v10 = vld [vmem:[%s2999_s7 + $0x10] sm:$0xff] }
 0xb3e   :  { %2017 = vmatmul.msk.bf16.vlgmr.msrb.gmra.mxu1 %vm202_vm3, %v1277_v11 }
 0xb48   :  { %v1295_v12 = vpop.f32.mrf.mxu2 }
 0xb50   :  { %v1297_v15 = vpop.f32.mrf.mxu2 }
 0xb64   :  { %v1358_v16 = vpop.f32.mrf.mxu1 }
 0xb65   :  { %v1337_v17 = vpop.f32.mrf.mxu0 }
 0xb66   :  { %v2163_v18 = vpack.i.bf16 %v1358_v16, %v1337_v17 }
 0xb68   :  { %2164 = vrot.lane.b32.xlu1 %v2163_v18, %s2420_s4  ;;  %v1316_v19 = vpop.f32.mrf.mxu3 }
 0xb6c   :  { %v1360_v20 = vpop.f32.mrf.mxu1 }
 0xb6d   :  { %v1339_v22 = vpop.f32.mrf.mxu0 }
 0xb70   :  { %v1318_v23 = vpop.f32.mrf.mxu3 }
 0xbb1   :  { %v1421_v21 = vpop.f32.mrf.mxu0 }
 0xbb7   :  { %v1379_v24 = vpop.f32.mrf.mxu2 }
 0xbb9   :  { %v1400_v25 = vpop.f32.mrf.mxu3  ;;  %v1423_v27 = vpop.f32.mrf.mxu0 }
 0xbba   :  { %v2168_v28 = vpack.i.bf16 %v1400_v25, %v1379_v24 }
 0xbbb   :  { %v1442_v29 = vpop.f32.mrf.mxu1 }
 0xbbc   :  { %v2173_v30 = vpack.i.bf16 %v1442_v29, %v1421_v21  ;;  %2169 = vrot.lane.b32.xlu2 %v2168_v28, %s3010_s3  ;;  %v1560_v29 = vperm.slane %v2881_v41, 2 }
 0xbbe   :  { %2174 = vrot.lane.b32.xlu0 %v2173_v30, %s3011_s23 }
 0xbbf   :  { %v1381_v31 = vpop.f32.mrf.mxu2 }
 0xbc1   :  { %v1402_v32 = vpop.f32.mrf.mxu3 }
 0xbc3   :  { %v1444_v34 = vpop.f32.mrf.mxu1 }
 0xbc4   :  { %v1563_v34 = vperm.slane %v2881_v41, 3 }
 0xbda   :  { %v2165_v38 = vpop.permute.xlu1 %2164 }
 0xbdb   :  { %v2167_v40 = vunpack.i.h.bf16 %v2165_v38  ;;  %v2166_v37 = vunpack.i.l.bf16 %v2165_v38 }
 0xbdd   :  { %v1471_v46 = vsel %vm202_vm3, %v1316_v19, %v2167_v40  ;;  %v1470_v47 = vsel %vm202_vm3, %v1295_v12, %v2166_v37 }
 0xc16   :  { %v2170_v39 = vpop.permute.xlu2 %2169 }
 0xc17   :  { %v2172_v42 = vunpack.i.h.bf16 %v2170_v39  ;;  %v2171_v43 = vunpack.i.l.bf16 %v2170_v39 }
 0xc19   :  { %v1473_v50 = vsel %vm690_vm5, %v1471_v46, %v2172_v42  ;;  %v1472_v51 = vsel %vm690_vm5, %v1470_v47, %v2171_v43  ;;  %v2116_v42 = vld [vmem:[%s3001_s9 + $0x38] sm:$0xff]  ;;  %v2115_v43 = vld [vmem:[%s3001_s9 + $0x30] sm:$0xff]  ;;  %v2113_v46 = vld [vmem:[%s3001_s9 + $0x20] sm:$0xff] }
 0xc1a   :  { %1654 = vmatpush.bf16.msra.mxu0 %v2116_v42 }
 0xc1e   :  { %1655 = vmatpush.bf16.msra.mxu0 %v2115_v43  ;;  %v2937_v43 = vld [vmem:[%s3003_s11] sm:$0x7] }
 0xc30   :  { %v2175_v44 = vpop.permute.xlu0 %2174 }
 0xc31   :  { %v2177_v48 = vunpack.i.h.bf16 %v2175_v44  ;;  %v2176_v49 = vunpack.i.l.bf16 %v2175_v44  ;;  %v2114_v44 = vld [vmem:[%s3001_s9 + $0x28] sm:$0xff] }
 0xc32   :  { %1656 = vmatpush.bf16.msra.mxu0 %v2114_v44  ;;  %v1722_v44 = vperm.slane %v2937_v43, 0 }
 0xc33   :  { %v1474_v52 = vsel %vm125_vm1, %v1472_v51, %v2176_v49  ;;  %v1475_v13 = vsel %vm125_vm1, %v1473_v50, %v2177_v48  ;;  %v2181_v48 = vld [vmem:[#allocation8 + $0x1] ss:$0 sm:$0xff] }
 0xc34   :  { %v1478_v45 = vpack.c.bf16 %v1475_v13, %v1474_v52 }
 0xc36   :  { %2031 = vmatmul.msk.bf16.vlgmr.msrb.gmra.mxu2 %vm177_vm2, %v1478_v45  ;;  %1657 = vmatpush.bf16.msra.mxu0 %v2113_v46 }
 0xcb9   :  { %v1509_v55 = vpop.f32.mrf.mxu2 }
 0xcba   :  { %v1510_v56 = vadd.f32 %v1509_v55, %v1484_v54 }
 0xcbc   :  { %v1514_v58 = vadd.f32 %v1510_v56, %v2739_v33  ;;  %v1622_v56 = vperm.slane %v2881_v41, 1 }
 0xcbe   :  { %v1516_v14 = vsel %vm177_vm2, %v1514_v58, 0.0 }
 0xcbf   :  { %1517 = vadd.xlane.f32.xlu1 %v1516_v14 }
 0xcc1   :  { %v1511_v57 = vpop.f32.mrf.mxu2 }
 0xcc2   :  { %v1512_v59 = vadd.f32 %v1511_v57, %v1484_v54 }
 0xcc4   :  { %v1515_v60 = vadd.f32 %v1512_v59, %v2741_v26  ;;  %v2112_v26 = vld [vmem:[%s2999_s7 + $0x18] sm:$0xff] }
 0xcc5   :  { %1598 = vmatpush.bf16.msrb.mxu3 %v2112_v26 }
 0xcc6   :  { %v1519_v61 = vsel %vm177_vm2, %v1515_v60, 0.0 }
 0xcc7   :  { %1520 = vadd.xlane.f32.xlu2 %v1519_v61 }
 0xcc9   :  { %1599 = vmatpush.bf16.msrb.mxu3 %v2111_v10 }
 0xd32   :  { %v1518_v62 = vpop.xlane.xlu1 %1517 }
 0xd33   :  { %v1522_v63 = vmul.f32 %v1518_v62, %v2692_v53 }
 0xd35   :  { %v1524_v0 = vsub.f32 %v1514_v58, %v1522_v63 }
 0xd37   :  { %v1526_v1 = vmul.f32 %v1524_v0, %v1524_v0 }
 0xd39   :  { %v1528_v2 = vsel %vm177_vm2, %v1526_v1, 0.0 }
 0xd3a   :  { %v1521_v3 = vpop.xlane.xlu2 %1520  ;;  %1529 = vadd.xlane.f32.xlu0 %v1528_v2 }
 0xd3b   :  { %v1523_v33 = vmul.f32 %v1521_v3, %v2692_v53 }
 0xd3d   :  { %v1525_v4 = vsub.f32 %v1515_v60, %v1523_v33 }
 0xd3f   :  { %v1527_v5 = vmul.f32 %v1525_v4, %v1525_v4 }
 0xd41   :  { %v1531_v6 = vsel %vm177_vm2, %v1527_v5, 0.0 }
 0xd42   :  { %1532 = vadd.xlane.f32.xlu1 %v1531_v6 }
 0xdad   :  { %v1530_v7 = vpop.xlane.xlu0 %1529 }
 0xdae   :  { %v1534_v8 = vmul.f32 %v1530_v7, %v2692_v53 }
 0xdb0   :  { %v1536_v9 = vadd.f32 1e-05, %v1534_v8  ;;  %v2118_v8 = vld [vmem:[%s3002_s10 + $0x8] sm:$0xff] }
 0xdb1   :  { %1744 = vmatpush.bf16.msra.mxu1 %v2118_v8  ;;  %v2119_v8 = vld [vmem:[%s3004_s12] sm:$0xff] }
 0xdb2   :  { %2257 = vrsqrt.f32 %v1536_v9  ;;  %vm1544_vm11 = vweird.f32 %v1536_v9 }
 0xdb5   :  { %v1533_v11 = vpop.xlane.xlu1 %1532 }
 0xdb6   :  { %v1535_v12 = vmul.f32 %v1533_v11, %v2692_v53 }
 0xdb8   :  { %v2258_v15 = vpop.eup %2257  ;;  %v1537_v16 = vadd.f32 1e-05, %v1535_v12  ;;  %v2117_v12 = vld [vmem:[%s3002_s10] sm:$0xff] }
 0xdb9   :  { %v1539_v17 = vmul.f32 %v2258_v15, %v1536_v9  ;;  %vm1545_vm0 = vweird.f32 %v2258_v15  ;;  %1745 = vmatpush.bf16.msra.mxu1 %v2117_v12 }
 0xdba   :  { %2259 = vrsqrt.f32 %v1537_v16  ;;  %vm1546_vm12 = vmor %vm1544_vm11, %vm1545_vm0  ;;  %vm1554_vm14 = vweird.f32 %v1537_v16 }
 0xdbb   :  { %v1540_v18 = vmul.f32 %v2258_v15, %v1539_v17 }
 0xdbd   :  { %v1541_v19 = vmul.f32 0.5, %v1540_v18 }
 0xdbf   :  { %v1542_v20 = vsub.f32 1.5, %v1541_v19 }
 0xdc0   :  { %v2260_v22 = vpop.eup %2259 }
 0xdc1   :  { %v1543_v23 = vmul.f32 %v2258_v15, %v1542_v20  ;;  %v1549_v21 = vmul.f32 %v2260_v22, %v1537_v16  ;;  %vm1555_vm13 = vweird.f32 %v2260_v22 }
 0xdc2   :  { %vm1556_vm4 = vmor %vm1554_vm14, %vm1555_vm13 }
 0xdc3   :  { %v1550_v24 = vmul.f32 %v2260_v22, %v1549_v21  ;;  %v1547_v25 = vsel %vm1546_vm12, %v2258_v15, %v1543_v23 }
 0xdc4   :  { %v1558_v30 = vmul.f32 %v1547_v25, %v1524_v0 }
 0xdc5   :  { %v1551_v27 = vmul.f32 0.5, %v1550_v24 }
 0xdc6   :  { %v1561_v35 = vmul.f32 %v1560_v29, %v1558_v30 }
 0xdc7   :  { %v1552_v28 = vsub.f32 1.5, %v1551_v27 }
 0xdc8   :  { %v1564_v39 = vadd.f32 %v1563_v34, %v1561_v35  ;;  %v1713_v35 = vperm.slane %v2881_v41, 5 }
 0xdc9   :  { %v1553_v31 = vmul.f32 %v2260_v22, %v1552_v28 }
 0xdcb   :  { %v1557_v32 = vsel %vm1556_vm4, %v2260_v22, %v1553_v31 }
 0xdcc   :  { %v1559_v36 = vmul.f32 %v1557_v32, %v1525_v4 }
 0xdce   :  { %v1562_v38 = vmul.f32 %v1560_v29, %v1559_v36 }
 0xdd0   :  { %v1565_v40 = vadd.f32 %v1563_v34, %v1562_v38 }
 0xdd2   :  { %v1566_v37 = vpack.c.bf16 %v1565_v40, %v1564_v39 }
 0xdd4   :  { %2044 = vmatmul.msk.bf16.vlgmr.msrb.gmra.mxu3 %vm177_vm2, %v1566_v37 }
 0xe57   :  { %v1601_v47 = vpop.f32.mrf.mxu3 }
 0xe58   :  { %v1602_v49 = vadd.f32 %v2181_v48, %v1601_v47 }
 0xe5a   :  { %v1608_v51 = vmul.f32 0.2, %v1602_v49  ;;  %vm1606_vm6 = vcmp.gt.f32.partialorder %v1602_v49, 0.0 }
 0xe5c   :  { %v1610_v45 = vsel %vm1606_vm6, %v1602_v49, %v1608_v51  ;;  %v2945_v51 = vld [vmem:[%s2992_s0] sm:$0xff] }
 0xe5f   :  { %v1603_v50 = vpop.f32.mrf.mxu3 }
 0xe60   :  { %v1604_v52 = vadd.f32 %v2181_v48, %v1603_v50 }
 0xe62   :  { %vm1607_vm7 = vcmp.gt.f32.partialorder %v1604_v52, 0.0  ;;  %v1609_v13 = vmul.f32 0.2, %v1604_v52 }
 0xe64   :  { %v1611_v54 = vsel %vm1607_vm7, %v1604_v52, %v1609_v13  ;;  %v2423_v52 = vmov 64.0  }
 0xe65   :  { %v1612_v55 = vpack.c.bf16 %v1611_v54, %v1610_v45 }
 0xe67   :  { %2069 = vmatmul.msk.bf16.vlgmr.msra.gmra.mxu0 %vm868_vm15, %v1612_v55 }
 0xee4   :  { %v1659_v58 = vpop.f32.mrf.mxu0 }
 0xee5   :  { %v1660_v14 = vadd.f32 %v1659_v58, %v1622_v56 }
 0xee7   :  { %v1664_v57 = vadd.f32 %v1660_v14, %v1564_v39 }
 0xee9   :  { %v1666_v59 = vsel %vm177_vm2, %v1664_v57, 0.0 }
 0xeea   :  { %1667 = vadd.xlane.f32.xlu2 %v1666_v59 }
 0xeec   :  { %v1661_v60 = vpop.f32.mrf.mxu0 }
 0xeed   :  { %v1662_v61 = vadd.f32 %v1661_v60, %v1622_v56 }
 0xeef   :  { %v1665_v62 = vadd.f32 %v1662_v61, %v1565_v40 }
 0xef1   :  { %v1669_v63 = vsel %vm177_vm2, %v1665_v62, 0.0 }
 0xef2   :  { %1670 = vadd.xlane.f32.xlu0 %v1669_v63 }
 0xf5d   :  { %v1668_v0 = vpop.xlane.xlu2 %1667 }
 0xf5e   :  { %v1672_v1 = vmul.f32 %v1668_v0, %v2692_v53 }
 0xf60   :  { %v1674_v2 = vsub.f32 %v1664_v57, %v1672_v1 }
 0xf62   :  { %v1676_v3 = vmul.f32 %v1674_v2, %v1674_v2 }
 0xf64   :  { %v1678_v33 = vsel %vm177_vm2, %v1676_v3, 0.0  ;;  %v2954_v3 = vld [vmem:[%s2992_s0 + $0x8] sm:$0xff] }
 0xf65   :  { %v1671_v4 = vpop.xlane.xlu0 %1670  ;;  %1679 = vadd.xlane.f32.xlu1 %v1678_v33  ;;  %v2122_v33 = vld [vmem:[%s3004_s12 + $0x18] sm:$0xff] }
 0xf66   :  { %v1673_v5 = vmul.f32 %v1671_v4, %v2692_v53  ;;  %1859 = vmatpush.bf16.msra.mxu2 %v2122_v33  ;;  %v2121_v4 = vld [vmem:[%s3004_s12 + $0x10] sm:$0xff] }
 0xf68   :  { %v1675_v6 = vsub.f32 %v1665_v62, %v1673_v5 }
 0xf6a   :  { %v1677_v26 = vmul.f32 %v1675_v6, %v1675_v6  ;;  %1860 = vmatpush.bf16.msra.mxu2 %v2121_v4 }
 0xf6c   :  { %v1681_v7 = vsel %vm177_vm2, %v1677_v26, 0.0  ;;  %v2120_v26 = vld [vmem:[%s3004_s12 + $0x8] sm:$0xff] }
 0xf6d   :  { %1682 = vadd.xlane.f32.xlu2 %v1681_v7 }
 0xf6e   :  { %1861 = vmatpush.bf16.msra.mxu2 %v2120_v26 }
 0xf72   :  { %1862 = vmatpush.bf16.msra.mxu2 %v2119_v8 }
 0xfd8   :  { %v1680_v9 = vpop.xlane.xlu1 %1679 }
 0xfd9   :  { %v1684_v10 = vmul.f32 %v1680_v9, %v2692_v53 }
 0xfdb   :  { %v1686_v11 = vadd.f32 1e-05, %v1684_v10 }
 0xfdd   :  { %2261 = vrsqrt.f32 %v1686_v11  ;;  %vm1694_vm9 = vweird.f32 %v1686_v11 }
 0xfe0   :  { %v1683_v15 = vpop.xlane.xlu2 %1682 }
 0xfe1   :  { %v1685_v16 = vmul.f32 %v1683_v15, %v2692_v53  ;;  %v1710_v53 = vperm.slane %v2881_v41, 4 }
 0xfe3   :  { %v2262_v17 = vpop.eup %2261  ;;  %v1687_v18 = vadd.f32 1e-05, %v1685_v16 }
 0xfe4   :  { %v1689_v19 = vmul.f32 %v2262_v17, %v1686_v11  ;;  %vm1695_vm8 = vweird.f32 %v2262_v17 }
 0xfe5   :  { %2263 = vrsqrt.f32 %v1687_v18  ;;  %vm1696_vm10 = vmor %vm1694_vm9, %vm1695_vm8  ;;  %vm1704_vm11 = vweird.f32 %v1687_v18 }
 0xfe6   :  { %v1690_v20 = vmul.f32 %v2262_v17, %v1689_v19  ;;  %2265 = vrcp.f32 %v2423_v52 }
 0xfe8   :  { %v1691_v22 = vmul.f32 0.5, %v1690_v20 }
 0xfea   :  { %v1692_v23 = vsub.f32 1.5, %v1691_v22 }
 0xfeb   :  { %v2264_v21 = vpop.eup %2263 }
 0xfec   :  { %v1693_v24 = vmul.f32 %v2262_v17, %v1692_v23  ;;  %v1699_v25 = vmul.f32 %v2264_v21, %v1687_v18  ;;  %vm1705_vm0 = vweird.f32 %v2264_v21  ;;  %v2266_v13 = vpop.eup %2265 }
 0xfed   :  { %vm1706_vm12 = vmor %vm1704_vm11, %vm1705_vm0  ;;  %v1759_v45 = vmul.f32 64.0, %v2266_v13 }
 0xfee   :  { %v1700_v27 = vmul.f32 %v2264_v21, %v1699_v25  ;;  %v1697_v28 = vsel %vm1696_vm10, %v2262_v17, %v1693_v24  ;;  %v1803_v24 = vperm.slane %v2937_v43, 1 }
 0xfef   :  { %v1708_v31 = vmul.f32 %v1697_v28, %v1674_v2  ;;  %v1760_v54 = vsub.f32 1.0, %v1759_v45 }
 0xff0   :  { %v1701_v29 = vmul.f32 0.5, %v1700_v27 }
 0xff1   :  { %v1711_v36 = vmul.f32 %v1710_v53, %v1708_v31  ;;  %v1761_v55 = vmul.f32 %v2266_v13, %v1760_v54 }
 0xff2   :  { %v1702_v30 = vsub.f32 1.5, %v1701_v29  ;;  %v1806_v29 = vperm.slane %v2937_v43, 2  ;;  %v2182_v43 = vld [vmem:[%s3005_s13] ss:$0 sm:$0xff] }
 0xff3   :  { %v1714_v40 = vadd.f32 %v1713_v35, %v1711_v36  ;;  %v1762_v56 = vadd.f32 %v2266_v13, %v1761_v55 }
 0xff4   :  { %v1703_v32 = vmul.f32 %v2264_v21, %v1702_v30 }
 0xff6   :  { %v1707_v34 = vsel %vm1706_vm12, %v2264_v21, %v1703_v32 }
 0xff7   :  { %v1709_v38 = vmul.f32 %v1707_v34, %v1675_v6 }
 0xff9   :  { %v1712_v39 = vmul.f32 %v1710_v53, %v1709_v38 }
 0xffb   :  { %v1715_v37 = vadd.f32 %v1713_v35, %v1712_v39 }
 0xffd   :  { %v1717_v42 = vpack.c.bf16 %v1715_v37, %v1714_v40 }
 0xfff   :  { %2078 = vmatmul.msk.bf16.vlgmr.msra.gmra.mxu1 %vm177_vm2, %v1717_v42  ;;  %vm1763_vm2 = vweird.f32 %v2266_v13 }
0x1000   :  { %v1764_v58 = vsel %vm1763_vm2, %v2266_v13, %v1762_v56 }
0x107c   :  { %v1747_v46 = vpop.f32.mrf.mxu1 }
0x107d   :  { %v1748_v47 = vadd.f32 %v1747_v46, %v1722_v44 }
0x107f   :  { %v1752_v48 = vsel %vm868_vm15, %v1748_v47, 0.0 }
0x1080   :  { %1753 = vadd.xlane.f32.xlu0 %v1752_v48 }
0x1084   :  { %v1749_v41 = vpop.f32.mrf.mxu1 }
0x1085   :  { %v1750_v49 = vadd.f32 %v1749_v41, %v1722_v44 }
0x1087   :  { %v1755_v50 = vsel %vm868_vm15, %v1750_v49, 0.0 }
0x1088   :  { %1756 = vadd.xlane.f32.xlu1 %v1755_v50 }
0x10a1   :  { %1873 = vrot.lane.b32.xlu1 %v2945_v51, %s2413_s29 }
0x10f3   :  { %v1754_v14 = vpop.xlane.xlu0 %1753 }
0x10f4   :  { %v1765_v57 = vmul.f32 %v1764_v58, %v1754_v14 }
0x10f6   :  { %v1767_v59 = vsub.f32 %v1748_v47, %v1765_v57 }
0x10f8   :  { %v1769_v60 = vmul.f32 %v1767_v59, %v1767_v59 }
0x10fa   :  { %v1771_v61 = vsel %vm868_vm15, %v1769_v60, 0.0 }
0x10fb   :  { %v1757_v62 = vpop.xlane.xlu1 %1756  ;;  %1772 = vadd.xlane.f32.xlu2 %v1771_v61 }
0x10fc   :  { %v1766_v63 = vmul.f32 %v1764_v58, %v1757_v62 }
0x10fe   :  { %v1768_v0 = vsub.f32 %v1750_v49, %v1766_v63 }
0x1100   :  { %v1770_v1 = vmul.f32 %v1768_v0, %v1768_v0 }
0x1102   :  { %v1774_v2 = vsel %vm868_vm15, %v1770_v1, 0.0 }
0x1103   :  { %1775 = vadd.xlane.f32.xlu0 %v1774_v2 }
0x1113   :  { %1875 = vrot.lane.b32.xlu2 %v2954_v3, %s2413_s29  ;;  %v1874_v47 = vpop.permute.xlu1 %1873 }
0x116e   :  { %v1773_v5 = vpop.xlane.xlu2 %1772 }
0x116f   :  { %v1777_v6 = vmul.f32 %v1773_v5, %v1764_v58 }
0x1171   :  { %v1779_v7 = vadd.f32 1e-05, %v1777_v6 }
0x1173   :  { %2267 = vrsqrt.f32 %v1779_v7  ;;  %vm1787_vm14 = vweird.f32 %v1779_v7 }
0x1176   :  { %v1776_v9 = vpop.xlane.xlu0 %1775  ;;  %v1876_v41 = vpop.permute.xlu2 %1875 }
0x1177   :  { %v1778_v10 = vmul.f32 %v1776_v9, %v1764_v58 }
0x1179   :  { %v2268_v11 = vpop.eup %2267  ;;  %v1780_v12 = vadd.f32 1e-05, %v1778_v10 }
0x117a   :  { %v1782_v15 = vmul.f32 %v2268_v11, %v1779_v7  ;;  %vm1788_vm13 = vweird.f32 %v2268_v11 }
0x117b   :  { %2269 = vrsqrt.f32 %v1780_v12  ;;  %vm1789_vm4 = vmor %vm1787_vm14, %vm1788_vm13  ;;  %vm1797_vm7 = vweird.f32 %v1780_v12 }
0x117c   :  { %v1783_v16 = vmul.f32 %v2268_v11, %v1782_v15 }
0x117e   :  { %v1784_v17 = vmul.f32 0.5, %v1783_v16 }
0x1180   :  { %v1785_v18 = vsub.f32 1.5, %v1784_v17 }
0x1181   :  { %v2270_v19 = vpop.eup %2269 }
0x1182   :  { %v1786_v20 = vmul.f32 %v2268_v11, %v1785_v18  ;;  %v1792_v22 = vmul.f32 %v2270_v19, %v1780_v12  ;;  %vm1798_vm6 = vweird.f32 %v2270_v19 }
0x1183   :  { %vm1799_vm8 = vmor %vm1797_vm7, %vm1798_vm6 }
0x1184   :  { %v1790_v23 = vsel %vm1789_vm4, %v2268_v11, %v1786_v20  ;;  %v1793_v21 = vmul.f32 %v2270_v19, %v1792_v22 }
0x1185   :  { %v1801_v25 = vmul.f32 %v1790_v23, %v1767_v59 }
0x1186   :  { %v1794_v27 = vmul.f32 0.5, %v1793_v21 }
0x1187   :  { %v1804_v30 = vmul.f32 %v1803_v24, %v1801_v25 }
0x1188   :  { %v1795_v28 = vsub.f32 1.5, %v1794_v27 }
0x1189   :  { %v1807_v32 = vadd.f32 %v1806_v29, %v1804_v30 }
0x118a   :  { %v1796_v53 = vmul.f32 %v2270_v19, %v1795_v28 }
0x118b   :  { %v1811_v38 = vmul.f32 0.2, %v1807_v32  ;;  %vm1809_vm9 = vcmp.gt.f32.partialorder %v1807_v32, 0.0 }
0x118c   :  { %v1800_v31 = vsel %vm1799_vm8, %v2270_v19, %v1796_v53 }
0x118d   :  { %v1802_v34 = vmul.f32 %v1800_v31, %v1768_v0  ;;  %v1813_v40 = vsel %vm1809_vm9, %v1807_v32, %v1811_v38 }
0x118f   :  { %v1805_v35 = vmul.f32 %v1803_v24, %v1802_v34 }
0x1191   :  { %v1808_v36 = vadd.f32 %v1806_v29, %v1805_v35 }
0x1193   :  { %vm1810_vm10 = vcmp.gt.f32.partialorder %v1808_v36, 0.0  ;;  %v1812_v39 = vmul.f32 0.2, %v1808_v36 }
0x1195   :  { %v1814_v37 = vsel %vm1810_vm10, %v1808_v36, %v1812_v39 }
0x1196   :  { %v1815_v42 = vpack.c.bf16 %v1814_v37, %v1813_v40 }
0x1198   :  { %2095 = vmatmul.msk.bf16.vlgmr.msra.gmra.mxu2 %vm868_vm15, %v1815_v42 }
0x121b   :  { %v1864_v44 = vpop.f32.mrf.mxu2 }
0x121c   :  { %v1865_v46 = vadd.f32 %v2182_v43, %v1864_v44 }
0x121e   :  { %1883 = vrot.lane.b32.xlu0 %v1865_v46, %s2420_s4  ;;  %v1879_v49 = vsub.f32 %v1865_v46, %v1874_v47  ;;  %v1869_v45 = vadd.f32 %v2945_v51, %v1865_v46 }
0x1223   :  { %v1866_v48 = vpop.f32.mrf.mxu2 }
0x1224   :  { %v1867_v50 = vadd.f32 %v2182_v43, %v1866_v48 }
0x1226   :  { %v1880_v52 = vsub.f32 %v1867_v50, %v1876_v41  ;;  %1885 = vrot.lane.b32.xlu1 %v1867_v50, %s2420_s4  ;;  %1891 = vrot.lane.b32.xlu0 %v1879_v49, %s3010_s3  ;;  %v1870_v54 = vadd.f32 %v2954_v3, %v1867_v50 }
0x1228   :  { %1893 = vrot.lane.b32.xlu2 %v1880_v52, %s3010_s3 }
0x1282   :  { %v1894_v14 = vpop.permute.xlu2 %1893 }
0x1290   :  { %v1884_v13 = vpop.permute.xlu0 %1883 }
0x1291   :  { %v1897_v55 = vsel %vm202_vm3, %v1869_v45, %v1884_v13 }
0x1298   :  { %v1886_v56 = vpop.permute.xlu1 %1885  ;;  %v1892_v58 = vpop.permute.xlu0 %1891 }
0x1299   :  { %v1898_v57 = vsel %vm202_vm3, %v1870_v54, %v1886_v56  ;;  %v1899_v59 = vsel %vm690_vm5, %v1897_v55, %v1892_v58 }
0x129a   :  { %v1900_v60 = vsel %vm690_vm5, %v1898_v57, %v1894_v14  ;;  %1901 = vst.msk [vmem:[#allocation10] sm:$0xff] %vm125_vm1, %v1899_v59 }
0x129b   :  { %1902 = vst.msk [vmem:[#allocation10 + $0x8] sm:$0xff] %vm125_vm1, %v1900_v60 }
0x129c   :  { %1915 = dma.vmem_to_hbm [thread:$0]  %s1908_s19, 256, %s1910_s21, [#allocation4], %s2425_s14, %s2425_s14, %s2420_s4  }
0x129d   :  { %2399 = dma.done.wait [#allocation4], 256  }
0x129e   :  { %2400 = vsyncadd [#allocation4], 4294967040 }
0x129f   :  { %1920 = vsyncpa [#allocation3], 1 }
0x12a0   :  { %1921 = vsyncpa [#allocation6], 1 }
0x12a1   :  { %1922 = vsyncpa [#allocation9], 1 }
0x12a2   :  { %1923 = vsyncpa [#allocation4], 1 }

</bundles_post_ra>
